<compile_context>
chip_gen: v7x
topology: tpu7x:2x2x1
jax: 0.10.0
libtpu: 0.0.40
codegen_flags: <defaults>
</compile_context>

<pallas_src>
import math
import functools

import jax
import jax.numpy as jnp
from jax.experimental import pallas as pl
from jax.experimental.pallas import tpu as pltpu

d_k = d_v = 32
d_model = 116
n_heads = 4
D_PAD = 128           # d_model rounded up to the 128-lane vreg width
LN_EPS = 1e-5         # nn.LayerNorm default


def mha_kernel(q_ref, k_ref, v_ref,
               wq_ref, bq_ref, wk_ref, bk_ref, wv_ref, bv_ref,
               wo_ref, bo_ref, gamma_ref, beta_ref,
               out_ref, *attn_refs):
    bb, S, Dp = q_ref.shape
    rows = bb * S
    scale = 1.0 / math.sqrt(d_k)
    mxu_dt = wq_ref.dtype          # f32 here; bf16 on v6e/v7x via mxu_dtype knob

    # Flatten the batch block into MXU rows: lane-dense (rows, 128) operands.
    xq = q_ref[...].reshape(rows, Dp)
    xk = k_ref[...].reshape(rows, Dp)
    xv = v_ref[...].reshape(rows, Dp)

    # ---- Fused projections: three lane-dense (rows,128)@(128,128) GEMMs with
    # one packed (1,128) bias add each (full MXU output width).
    q_all = jnp.dot(xq.astype(mxu_dt), wq_ref[...],
                    preferred_element_type=jnp.float32) + bq_ref[...]
    k_all = jnp.dot(xk.astype(mxu_dt), wk_ref[...],
                    preferred_element_type=jnp.float32) + bk_ref[...]
    v_all = jnp.dot(xv.astype(mxu_dt), wv_ref[...],
                    preferred_element_type=jnp.float32) + bv_ref[...]

    attn_ref = attn_refs[0] if attn_refs else None
    flat_attn = attn_ref is not None and attn_ref.ndim == 3   # (bb,1,h*S*S) layout

    ctx_heads = []
    attn_flat_heads = []
    for h in range(n_heads):               # static unroll over the 4 heads
        lo = h * d_k
        # Head split = static lane slices of the fused projection outputs.
        qh = q_all[:, lo:lo + d_k].reshape(bb, S, d_k)
        kh = k_all[:, lo:lo + d_k].reshape(bb, S, d_k)
        vh = v_all[:, lo:lo + d_v].reshape(bb, S, d_v)

        # Contract on d_k directly — no kh.T materialization.
        scores = jnp.einsum('bqd,bkd->bqk',
                            qh.astype(mxu_dt), kh.astype(mxu_dt),
                            preferred_element_type=jnp.float32) * scale
        scores = scores - jnp.max(scores, axis=-1, keepdims=True)
        e = jnp.exp(scores)
        attn = e * pl.reciprocal(jnp.sum(e, axis=-1, keepdims=True), approx=True)

        if attn_ref is not None:
            if flat_attn:
                # collected for one lane-dense store below (small-S path)
                attn_flat_heads.append(attn.reshape(bb, 1, S * S))
            else:
                # S is a multiple of 128: store each head directly, no concat.
                attn_ref[:, h] = attn.astype(attn_ref.dtype)

        ctx = jnp.einsum('bqk,bkd->bqd',
                         attn.astype(mxu_dt), vh.astype(mxu_dt),
                         preferred_element_type=jnp.float32)        # (bb,S,d_v)
        ctx_heads.append(ctx.reshape(rows, d_v))

    if attn_ref is not None and flat_attn:
        # Single lane-dense store of all heads (n_heads*S*S lanes) — avoids
        # 8-lane masked vst.msk stores at small S.
        attn_ref[...] = jnp.concatenate(attn_flat_heads,
                                        axis=-1).astype(attn_ref.dtype)

    # ---- Fused output projection: pack heads on the lane dim and run ONE
    # (rows,128)@(128,128) GEMM (K = n_heads*d_v = 128).
    ctx_packed = jnp.concatenate(ctx_heads, axis=-1)            # (rows, 128)
    out = jnp.dot(ctx_packed.astype(mxu_dt), wo_ref[...],
                  preferred_element_type=jnp.float32) + bo_ref[...] + xq

    # ---- LayerNorm over the real d_model=116 features.  Pad lanes are masked
    # explicitly in both the mean and the variance, so correctness does not
    # rely on the "pad lanes of out are zero" invariant.
    inv_n = 1.0 / d_model
    lane = jax.lax.broadcasted_iota(jnp.int32, (rows, Dp), 1)
    feat = lane < d_model
    out_m = jnp.where(feat, out, 0.0)
    mean = jnp.sum(out_m, axis=-1, keepdims=True) * inv_n
    centered = out - mean
    cvar = jnp.where(feat, centered, 0.0)
    var = jnp.sum(cvar * cvar, axis=-1, keepdims=True) * inv_n
    normed = centered * jax.lax.rsqrt(var + LN_EPS)
    y = normed * gamma_ref[...] + beta_ref[...]      # gamma/beta pad lanes = 0

    out_ref[...] = y.reshape(bb, S, Dp).astype(out_ref.dtype)  # 128-lane store


def _pad_last(x, target):
    return jnp.pad(x, [(0, 0)] * (x.ndim - 1) + [(0, target - x.shape[-1])])


def _choose_batch_block(B, S):
    """Pick bb (rows = bb*S per grid step).

    Targets: (a) rows >= ~256 to fill the MXU and amortize the ~0.35us/step
    pipeline overhead, (b) cap the per-step attn block (bb*n_heads*S^2 f32,
    double buffered) so it fits v7x's smaller VMEM, (c) keep >= 2 grid steps
    when the batch allows (megacore sharding on v7x, DMA/compute overlap).
    """
    bb = max(1, min(B, max(1, 256 // S)))
    while bb > 1 and bb * n_heads * S * S * 4 > (8 << 20):   # attn block <= 8 MiB
        bb -= 1
    while B % bb:
        bb -= 1
    if B // bb < 2 and B >= 2:          # prefer a grid of >= 2 steps
        bb = max(1, B // 2)
        while B % bb:
            bb -= 1
    return bb


@functools.partial(jax.jit,
                   static_argnames=("batch_block", "mxu_dtype", "return_attn"))
def multi_head_attention(Q, K, V, params, batch_block=None,
                         mxu_dtype=jnp.float32, return_attn=True):
    B, S, D = Q.shape
    assert D == d_model
    wq, bq, wk, bk, wv, bv, wo, bo, gamma, beta = params

    bb = _choose_batch_block(B, S) if batch_block is None else batch_block
    assert B % bb == 0
    grid = (B // bb,)
    Dp = D_PAD

    # Zero-pad feature dim to 128 lanes (lane-dense GEMMs, unmasked stores).
    Qp, Kp, Vp = _pad_last(Q, Dp), _pad_last(K, Dp), _pad_last(V, Dp)

    def pad_rows(w):          # (d_model, 128) -> (128, 128), zero pad rows
        return jnp.pad(w, ((0, Dp - d_model), (0, 0)))

    # Packed weight layouts (no per-head splitting host-side): projections are
    # (Dp, n_heads*d_k) = (128,128), W_O is (n_heads*d_v, Dp) = (128,128).
    # On v6e/v7x pass mxu_dtype=jnp.bfloat16 for the fast MXU path.
    wq_p = pad_rows(wq).astype(mxu_dtype)
    wk_p = pad_rows(wk).astype(mxu_dtype)
    wv_p = pad_rows(wv).astype(mxu_dtype)
    wo_p = _pad_last(wo, Dp).astype(mxu_dtype)
    bo_p = _pad_last(bo, Dp)
    gamma_p = _pad_last(gamma, Dp)
    beta_p = _pad_last(beta, Dp)

    seq_spec = pl.BlockSpec((bb, S, Dp), lambda i: (i, 0, 0))
    full2 = lambda shp: pl.BlockSpec(shp, lambda i: (0, 0))

    out_shapes = [jax.ShapeDtypeStruct((B, S, Dp), Q.dtype)]
    out_specs = [pl.BlockSpec((bb, S, Dp), lambda i: (i, 0, 0))]

    flat_attn = (S % 128 != 0)
    if return_attn:
        if flat_attn:
            # Lane-dense attn layout for small S: n_heads*S*S lanes per row;
            # reshaped back to (B, n_heads, S, S) outside the kernel.
            out_shapes.append(
                jax.ShapeDtypeStruct((B, 1, n_heads * S * S), jnp.float32))
            out_specs.append(
                pl.BlockSpec((bb, 1, n_heads * S * S), lambda i: (i, 0, 0)))
        else:
            out_shapes.append(
                jax.ShapeDtypeStruct((B, n_heads, S, S), jnp.float32))
            out_specs.append(
                pl.BlockSpec((bb, n_heads, S, S), lambda i: (i, 0, 0, 0)))

    results = pl.pallas_call(
        mha_kernel,
        out_shape=tuple(out_shapes),
        grid_spec=pltpu.PrefetchScalarGridSpec(
            num_scalar_prefetch=0,
            grid=grid,
            in_specs=[
                seq_spec, seq_spec, seq_spec,
                full2(wq_p.shape), full2(bq.shape),
                full2(wk_p.shape), full2(bk.shape),
                full2(wv_p.shape), full2(bv.shape),
                full2(wo_p.shape), full2(bo_p.shape),
                full2(gamma_p.shape), full2(beta_p.shape),
            ],
            out_specs=out_specs,
        ),
        compiler_params=pltpu.CompilerParams(
            dimension_semantics=("parallel",)),
    )(Qp, Kp, Vp, wq_p, bq, wk_p, bk, wv_p, bv, wo_p, bo_p, gamma_p, beta_p)

    if return_attn:
        out_p, attn = results
        if flat_attn:
            attn = attn.reshape(B, n_heads, S, S)
    else:
        (out_p,) = results
        attn = None
    return out_p[:, :, :d_model], attn


def reference(Q, K, V, params):
    """Pure-JAX reference mirroring the PyTorch forward."""
    wq, bq, wk, bk, wv, bv, wo, bo, gamma, beta = params
    B, S, _ = Q.shape
    q_s = (Q @ wq + bq).reshape(B, S, n_heads, d_k).transpose(0, 2, 1, 3)
    k_s = (K @ wk + bk).reshape(B, S, n_heads, d_k).transpose(0, 2, 1, 3)
    v_s = (V @ wv + bv).reshape(B, S, n_heads, d_v).transpose(0, 2, 1, 3)
    scores = jnp.einsum("bhqd,bhkd->bhqk", q_s, k_s) / math.sqrt(d_k)
    attn = jax.nn.softmax(scores, axis=-1)
    context = jnp.einsum("bhqk,bhkd->bhqd", attn, v_s)
    context = context.transpose(0, 2, 1, 3).reshape(B, S, n_heads * d_v)
    out = context @ wo + bo + Q
    mean = jnp.mean(out, axis=-1, keepdims=True)
    var = jnp.mean((out - mean) ** 2, axis=-1, keepdims=True)
    out = (out - mean) * jax.lax.rsqrt(var + LN_EPS) * gamma + beta
    return out, attn


def init_params(key):
    ks = jax.random.split(key, 8)

    def lin(kw, kb, fan_in, fan_out):
        bound = 1.0 / math.sqrt(fan_in)
        w = jax.random.uniform(kw, (fan_in, fan_out), jnp.float32, -bound, bound)
        b = jax.random.uniform(kb, (1, fan_out), jnp.float32, -bound, bound)
        return w, b

    wq, bq = lin(ks[0], ks[1], d_model, n_heads * d_k)
    wk, bk = lin(ks[2], ks[3], d_model, n_heads * d_k)
    wv, bv = lin(ks[4], ks[5], d_model, n_heads * d_v)
    wo, bo = lin(ks[6], ks[7], n_heads * d_v, d_model)
    gamma = jnp.ones((1, d_model), jnp.float32)   # nn.LayerNorm default weight
    beta = jnp.zeros((1, d_model), jnp.float32)   # nn.LayerNorm default bias
    return (wq, bq, wk, bk, wv, bv, wo, bo, gamma, beta)


if __name__ == "__main__":
    B, S = 2, 8
    key = jax.random.PRNGKey(0)
    kq, kk, kv, kp = jax.random.split(key, 4)
    Q = jax.random.normal(kq, (B, S, d_model), jnp.float32)
    K = jax.random.normal(kk, (B, S, d_model), jnp.float32)
    V = jax.random.normal(kv, (B, S, d_model), jnp.float32)
    params = init_params(kp)

    out, attn = multi_head_attention(Q, K, V, params)
    out = jax.block_until_ready(out)
    attn = jax.block_until_ready(attn)

    ref_out, ref_attn = reference(Q, K, V, params)
    # approx=True softmax reciprocal (EUP vrcp) => loosened tolerances vs f32 ref.
    assert jnp.allclose(attn, ref_attn, atol=1e-3, rtol=1e-3), "attn mismatch"
    assert jnp.allclose(out, ref_out, atol=5e-3, rtol=5e-3), "output mismatch"

    print("KERNEL_OK")
</pallas_src>

<mosaic_0001>
module attributes {stable_mosaic.version = 11 : i64} {
  func.func @mha_kernel(%arg0: i32, %arg1: memref<1x8x128xf32, #tpu.memory_space<vmem>>, %arg2: memref<1x8x128xf32, #tpu.memory_space<vmem>>, %arg3: memref<1x8x128xf32, #tpu.memory_space<vmem>>, %arg4: memref<128x128xf32, #tpu.memory_space<vmem>>, %arg5: memref<1x128xf32, #tpu.memory_space<vmem>>, %arg6: memref<128x128xf32, #tpu.memory_space<vmem>>, %arg7: memref<1x128xf32, #tpu.memory_space<vmem>>, %arg8: memref<128x128xf32, #tpu.memory_space<vmem>>, %arg9: memref<1x128xf32, #tpu.memory_space<vmem>>, %arg10: memref<128x128xf32, #tpu.memory_space<vmem>>, %arg11: memref<1x128xf32, #tpu.memory_space<vmem>>, %arg12: memref<1x128xf32, #tpu.memory_space<vmem>>, %arg13: memref<1x128xf32, #tpu.memory_space<vmem>>, %arg14: memref<1x8x128xf32, #tpu.memory_space<vmem>>, %arg15: memref<1x1x256xf32, #tpu.memory_space<vmem>>) attributes {dimension_semantics = [#tpu.dimension_semantics<parallel>], iteration_bounds = array<i64: 2>, scalar_prefetch = 0 : i64, scratch_operands = 0 : i64, tpu.core_type = #tpu.core_type<tc>, window_params = [{transform_indices = @transform_0, window_bounds = array<i64: 1, 8, 128>}, {transform_indices = @transform_1, window_bounds = array<i64: 1, 8, 128>}, {transform_indices = @transform_2, window_bounds = array<i64: 1, 8, 128>}, {pipeline_mode = #tpu.pipeline_mode<synchronous>, transform_indices = @transform_3, window_bounds = array<i64: 128, 128>}, {pipeline_mode = #tpu.pipeline_mode<synchronous>, transform_indices = @transform_4, window_bounds = array<i64: 1, 128>}, {pipeline_mode = #tpu.pipeline_mode<synchronous>, transform_indices = @transform_5, window_bounds = array<i64: 128, 128>}, {pipeline_mode = #tpu.pipeline_mode<synchronous>, transform_indices = @transform_6, window_bounds = array<i64: 1, 128>}, {pipeline_mode = #tpu.pipeline_mode<synchronous>, transform_indices = @transform_7, window_bounds = array<i64: 128, 128>}, {pipeline_mode = #tpu.pipeline_mode<synchronous>, transform_indices = @transform_8, window_bounds = array<i64: 1, 128>}, {pipeline_mode = #tpu.pipeline_mode<synchronous>, transform_indices = @transform_9, window_bounds = array<i64: 128, 128>}, {pipeline_mode = #tpu.pipeline_mode<synchronous>, transform_indices = @transform_10, window_bounds = array<i64: 1, 128>}, {pipeline_mode = #tpu.pipeline_mode<synchronous>, transform_indices = @transform_11, window_bounds = array<i64: 1, 128>}, {pipeline_mode = #tpu.pipeline_mode<synchronous>, transform_indices = @transform_12, window_bounds = array<i64: 1, 128>}, {transform_indices = @transform_13, window_bounds = array<i64: 1, 8, 128>}, {transform_indices = @transform_14, window_bounds = array<i64: 1, 1, 256>}]} {
    %c0 = arith.constant 0 : index
    %c0_0 = arith.constant 0 : index
    %c0_1 = arith.constant 0 : index
    %0 = vector.load %arg1[%c0, %c0_0, %c0_1] : memref<1x8x128xf32, #tpu.memory_space<vmem>>, vector<1x8x128xf32>
    %1 = vector.shape_cast %0 : vector<1x8x128xf32> to vector<8x128xf32>
    %c0_2 = arith.constant 0 : index
    %c0_3 = arith.constant 0 : index
    %c0_4 = arith.constant 0 : index
    %2 = vector.load %arg2[%c0_2, %c0_3, %c0_4] : memref<1x8x128xf32, #tpu.memory_space<vmem>>, vector<1x8x128xf32>
    %3 = vector.shape_cast %2 : vector<1x8x128xf32> to vector<8x128xf32>
    %c0_5 = arith.constant 0 : index
    %c0_6 = arith.constant 0 : index
    %c0_7 = arith.constant 0 : index
    %4 = vector.load %arg3[%c0_5, %c0_6, %c0_7] : memref<1x8x128xf32, #tpu.memory_space<vmem>>, vector<1x8x128xf32>
    %5 = vector.shape_cast %4 : vector<1x8x128xf32> to vector<8x128xf32>
    %c0_8 = arith.constant 0 : index
    %c0_9 = arith.constant 0 : index
    %6 = vector.load %arg4[%c0_8, %c0_9] : memref<128x128xf32, #tpu.memory_space<vmem>>, vector<128x128xf32>
    %cst = arith.constant dense<0.000000e+00> : vector<8x128xf32>
    %7 = tpu.matmul %1, %6, %cst {dimension_numbers = #tpu.dot_dimension_numbers<[1], [0], [0], [1], [0, 0, 1, 1], [], []>} : vector<8x128xf32>, vector<128x128xf32>, vector<8x128xf32> -> vector<8x128xf32>
    %c0_10 = arith.constant 0 : index
    %c0_11 = arith.constant 0 : index
    %8 = vector.load %arg5[%c0_10, %c0_11] : memref<1x128xf32, #tpu.memory_space<vmem>>, vector<1x128xf32>
    %9 = vector.broadcast %8 : vector<1x128xf32> to vector<8x128xf32>
    %10 = arith.addf %7, %9 : vector<8x128xf32>
    %c0_12 = arith.constant 0 : index
    %c0_13 = arith.constant 0 : index
    %11 = vector.load %arg6[%c0_12, %c0_13] : memref<128x128xf32, #tpu.memory_space<vmem>>, vector<128x128xf32>
    %cst_14 = arith.constant dense<0.000000e+00> : vector<8x128xf32>
    %12 = tpu.matmul %3, %11, %cst_14 {dimension_numbers = #tpu.dot_dimension_numbers<[1], [0], [0], [1], [0, 0, 1, 1], [], []>} : vector<8x128xf32>, vector<128x128xf32>, vector<8x128xf32> -> vector<8x128xf32>
    %c0_15 = arith.constant 0 : index
    %c0_16 = arith.constant 0 : index
    %13 = vector.load %arg7[%c0_15, %c0_16] : memref<1x128xf32, #tpu.memory_space<vmem>>, vector<1x128xf32>
    %14 = vector.broadcast %13 : vector<1x128xf32> to vector<8x128xf32>
    %15 = arith.addf %12, %14 : vector<8x128xf32>
    %c0_17 = arith.constant 0 : index
    %c0_18 = arith.constant 0 : index
    %16 = vector.load %arg8[%c0_17, %c0_18] : memref<128x128xf32, #tpu.memory_space<vmem>>, vector<128x128xf32>
    %cst_19 = arith.constant dense<0.000000e+00> : vector<8x128xf32>
    %17 = tpu.matmul %5, %16, %cst_19 {dimension_numbers = #tpu.dot_dimension_numbers<[1], [0], [0], [1], [0, 0, 1, 1], [], []>} : vector<8x128xf32>, vector<128x128xf32>, vector<8x128xf32> -> vector<8x128xf32>
    %c0_20 = arith.constant 0 : index
    %c0_21 = arith.constant 0 : index
    %18 = vector.load %arg9[%c0_20, %c0_21] : memref<1x128xf32, #tpu.memory_space<vmem>>, vector<1x128xf32>
    %19 = vector.broadcast %18 : vector<1x128xf32> to vector<8x128xf32>
    %20 = arith.addf %17, %19 : vector<8x128xf32>
    %21 = vector.extract_strided_slice %10 {offsets = [0, 0], sizes = [8, 32], strides = [1, 1]} : vector<8x128xf32> to vector<8x32xf32>
    %22 = vector.shape_cast %21 : vector<8x32xf32> to vector<1x8x32xf32>
    %23 = vector.extract_strided_slice %15 {offsets = [0, 0], sizes = [8, 32], strides = [1, 1]} : vector<8x128xf32> to vector<8x32xf32>
    %24 = vector.shape_cast %23 : vector<8x32xf32> to vector<1x8x32xf32>
    %25 = vector.extract_strided_slice %20 {offsets = [0, 0], sizes = [8, 32], strides = [1, 1]} : vector<8x128xf32> to vector<8x32xf32>
    %26 = vector.shape_cast %25 : vector<8x32xf32> to vector<1x8x32xf32>
    "tpu.trace_start"() <{level = 10 : i32, message = "bqd,bkd->bqk"}> : () -> ()
    %cst_22 = arith.constant dense<0.000000e+00> : vector<1x8x8xf32>
    %27 = tpu.matmul %22, %24, %cst_22 {dimension_numbers = #tpu.dot_dimension_numbers<[2], [2], [1], [1], [0, 0, 0, 1, 1, 1], [0], [0]>} : vector<1x8x32xf32>, vector<1x8x32xf32>, vector<1x8x8xf32> -> vector<1x8x8xf32>
    "tpu.trace_stop"() : () -> ()
    %cst_23 = arith.constant 0.176776692 : f32
    %28 = vector.broadcast %cst_23 : f32 to vector<1x8x8xf32>
    %29 = arith.mulf %27, %28 : vector<1x8x8xf32>
    %cst_24 = arith.constant dense<0xFF800000> : vector<1x8xf32>
    %30 = vector.multi_reduction <maximumf>, %29, %cst_24 [2] : vector<1x8x8xf32> to vector<1x8xf32>
    %31 = vector.shape_cast %30 : vector<1x8xf32> to vector<1x8x1xf32>
    %32 = vector.broadcast %31 : vector<1x8x1xf32> to vector<1x8x8xf32>
    %33 = arith.subf %29, %32 : vector<1x8x8xf32>
    %34 = math.exp %33 : vector<1x8x8xf32>
    %cst_25 = arith.constant dense<0.000000e+00> : vector<1x8xf32>
    %35 = vector.multi_reduction <add>, %34, %cst_25 [2] : vector<1x8x8xf32> to vector<1x8xf32>
    %36 = vector.shape_cast %35 : vector<1x8xf32> to vector<1x8x1xf32>
    %37 = tpu.reciprocal %36 {approx = true} : vector<1x8x1xf32> -> vector<1x8x1xf32>
    %38 = vector.broadcast %37 : vector<1x8x1xf32> to vector<1x8x8xf32>
    %39 = arith.mulf %34, %38 : vector<1x8x8xf32>
    %40 = vector.shape_cast %39 : vector<1x8x8xf32> to vector<1x1x64xf32>
    "tpu.trace_start"() <{level = 10 : i32, message = "bqk,bkd->bqd"}> : () -> ()
    %cst_26 = arith.constant dense<0.000000e+00> : vector<1x8x32xf32>
    %41 = tpu.matmul %39, %26, %cst_26 {dimension_numbers = #tpu.dot_dimension_numbers<[2], [1], [1], [2], [0, 0, 0, 1, 1, 2], [0], [0]>} : vector<1x8x8xf32>, vector<1x8x32xf32>, vector<1x8x32xf32> -> vector<1x8x32xf32>
    "tpu.trace_stop"() : () -> ()
    %42 = vector.shape_cast %41 : vector<1x8x32xf32> to vector<8x32xf32>
    %43 = vector.extract_strided_slice %10 {offsets = [0, 32], sizes = [8, 32], strides = [1, 1]} : vector<8x128xf32> to vector<8x32xf32>
    %44 = vector.shape_cast %43 : vector<8x32xf32> to vector<1x8x32xf32>
    %45 = vector.extract_strided_slice %15 {offsets = [0, 32], sizes = [8, 32], strides = [1, 1]} : vector<8x128xf32> to vector<8x32xf32>
    %46 = vector.shape_cast %45 : vector<8x32xf32> to vector<1x8x32xf32>
    %47 = vector.extract_strided_slice %20 {offsets = [0, 32], sizes = [8, 32], strides = [1, 1]} : vector<8x128xf32> to vector<8x32xf32>
    %48 = vector.shape_cast %47 : vector<8x32xf32> to vector<1x8x32xf32>
    "tpu.trace_start"() <{level = 10 : i32, message = "bqd,bkd->bqk"}> : () -> ()
    %cst_27 = arith.constant dense<0.000000e+00> : vector<1x8x8xf32>
    %49 = tpu.matmul %44, %46, %cst_27 {dimension_numbers = #tpu.dot_dimension_numbers<[2], [2], [1], [1], [0, 0, 0, 1, 1, 1], [0], [0]>} : vector<1x8x32xf32>, vector<1x8x32xf32>, vector<1x8x8xf32> -> vector<1x8x8xf32>
    "tpu.trace_stop"() : () -> ()
    %cst_28 = arith.constant 0.176776692 : f32
    %50 = vector.broadcast %cst_28 : f32 to vector<1x8x8xf32>
    %51 = arith.mulf %49, %50 : vector<1x8x8xf32>
    %cst_29 = arith.constant dense<0xFF800000> : vector<1x8xf32>
    %52 = vector.multi_reduction <maximumf>, %51, %cst_29 [2] : vector<1x8x8xf32> to vector<1x8xf32>
    %53 = vector.shape_cast %52 : vector<1x8xf32> to vector<1x8x1xf32>
    %54 = vector.broadcast %53 : vector<1x8x1xf32> to vector<1x8x8xf32>
    %55 = arith.subf %51, %54 : vector<1x8x8xf32>
    %56 = math.exp %55 : vector<1x8x8xf32>
    %cst_30 = arith.constant dense<0.000000e+00> : vector<1x8xf32>
    %57 = vector.multi_reduction <add>, %56, %cst_30 [2] : vector<1x8x8xf32> to vector<1x8xf32>
    %58 = vector.shape_cast %57 : vector<1x8xf32> to vector<1x8x1xf32>
    %59 = tpu.reciprocal %58 {approx = true} : vector<1x8x1xf32> -> vector<1x8x1xf32>
    %60 = vector.broadcast %59 : vector<1x8x1xf32> to vector<1x8x8xf32>
    %61 = arith.mulf %56, %60 : vector<1x8x8xf32>
    %62 = vector.shape_cast %61 : vector<1x8x8xf32> to vector<1x1x64xf32>
    "tpu.trace_start"() <{level = 10 : i32, message = "bqk,bkd->bqd"}> : () -> ()
    %cst_31 = arith.constant dense<0.000000e+00> : vector<1x8x32xf32>
    %63 = tpu.matmul %61, %48, %cst_31 {dimension_numbers = #tpu.dot_dimension_numbers<[2], [1], [1], [2], [0, 0, 0, 1, 1, 2], [0], [0]>} : vector<1x8x8xf32>, vector<1x8x32xf32>, vector<1x8x32xf32> -> vector<1x8x32xf32>
    "tpu.trace_stop"() : () -> ()
    %64 = vector.shape_cast %63 : vector<1x8x32xf32> to vector<8x32xf32>
    %65 = vector.extract_strided_slice %10 {offsets = [0, 64], sizes = [8, 32], strides = [1, 1]} : vector<8x128xf32> to vector<8x32xf32>
    %66 = vector.shape_cast %65 : vector<8x32xf32> to vector<1x8x32xf32>
    %67 = vector.extract_strided_slice %15 {offsets = [0, 64], sizes = [8, 32], strides = [1, 1]} : vector<8x128xf32> to vector<8x32xf32>
    %68 = vector.shape_cast %67 : vector<8x32xf32> to vector<1x8x32xf32>
    %69 = vector.extract_strided_slice %20 {offsets = [0, 64], sizes = [8, 32], strides = [1, 1]} : vector<8x128xf32> to vector<8x32xf32>
    %70 = vector.shape_cast %69 : vector<8x32xf32> to vector<1x8x32xf32>
    "tpu.trace_start"() <{level = 10 : i32, message = "bqd,bkd->bqk"}> : () -> ()
    %cst_32 = arith.constant dense<0.000000e+00> : vector<1x8x8xf32>
    %71 = tpu.matmul %66, %68, %cst_32 {dimension_numbers = #tpu.dot_dimension_numbers<[2], [2], [1], [1], [0, 0, 0, 1, 1, 1], [0], [0]>} : vector<1x8x32xf32>, vector<1x8x32xf32>, vector<1x8x8xf32> -> vector<1x8x8xf32>
    "tpu.trace_stop"() : () -> ()
    %cst_33 = arith.constant 0.176776692 : f32
    %72 = vector.broadcast %cst_33 : f32 to vector<1x8x8xf32>
    %73 = arith.mulf %71, %72 : vector<1x8x8xf32>
    %cst_34 = arith.constant dense<0xFF800000> : vector<1x8xf32>
    %74 = vector.multi_reduction <maximumf>, %73, %cst_34 [2] : vector<1x8x8xf32> to vector<1x8xf32>
    %75 = vector.shape_cast %74 : vector<1x8xf32> to vector<1x8x1xf32>
    %76 = vector.broadcast %75 : vector<1x8x1xf32> to vector<1x8x8xf32>
    %77 = arith.subf %73, %76 : vector<1x8x8xf32>
    %78 = math.exp %77 : vector<1x8x8xf32>
    %cst_35 = arith.constant dense<0.000000e+00> : vector<1x8xf32>
    %79 = vector.multi_reduction <add>, %78, %cst_35 [2] : vector<1x8x8xf32> to vector<1x8xf32>
    %80 = vector.shape_cast %79 : vector<1x8xf32> to vector<1x8x1xf32>
    %81 = tpu.reciprocal %80 {approx = true} : vector<1x8x1xf32> -> vector<1x8x1xf32>
    %82 = vector.broadcast %81 : vector<1x8x1xf32> to vector<1x8x8xf32>
    %83 = arith.mulf %78, %82 : vector<1x8x8xf32>
    %84 = vector.shape_cast %83 : vector<1x8x8xf32> to vector<1x1x64xf32>
    "tpu.trace_start"() <{level = 10 : i32, message = "bqk,bkd->bqd"}> : () -> ()
    %cst_36 = arith.constant dense<0.000000e+00> : vector<1x8x32xf32>
    %85 = tpu.matmul %83, %70, %cst_36 {dimension_numbers = #tpu.dot_dimension_numbers<[2], [1], [1], [2], [0, 0, 0, 1, 1, 2], [0], [0]>} : vector<1x8x8xf32>, vector<1x8x32xf32>, vector<1x8x32xf32> -> vector<1x8x32xf32>
    "tpu.trace_stop"() : () -> ()
    %86 = vector.shape_cast %85 : vector<1x8x32xf32> to vector<8x32xf32>
    %87 = vector.extract_strided_slice %10 {offsets = [0, 96], sizes = [8, 32], strides = [1, 1]} : vector<8x128xf32> to vector<8x32xf32>
    %88 = vector.shape_cast %87 : vector<8x32xf32> to vector<1x8x32xf32>
    %89 = vector.extract_strided_slice %15 {offsets = [0, 96], sizes = [8, 32], strides = [1, 1]} : vector<8x128xf32> to vector<8x32xf32>
    %90 = vector.shape_cast %89 : vector<8x32xf32> to vector<1x8x32xf32>
    %91 = vector.extract_strided_slice %20 {offsets = [0, 96], sizes = [8, 32], strides = [1, 1]} : vector<8x128xf32> to vector<8x32xf32>
    %92 = vector.shape_cast %91 : vector<8x32xf32> to vector<1x8x32xf32>
    "tpu.trace_start"() <{level = 10 : i32, message = "bqd,bkd->bqk"}> : () -> ()
    %cst_37 = arith.constant dense<0.000000e+00> : vector<1x8x8xf32>
    %93 = tpu.matmul %88, %90, %cst_37 {dimension_numbers = #tpu.dot_dimension_numbers<[2], [2], [1], [1], [0, 0, 0, 1, 1, 1], [0], [0]>} : vector<1x8x32xf32>, vector<1x8x32xf32>, vector<1x8x8xf32> -> vector<1x8x8xf32>
    "tpu.trace_stop"() : () -> ()
    %cst_38 = arith.constant 0.176776692 : f32
    %94 = vector.broadcast %cst_38 : f32 to vector<1x8x8xf32>
    %95 = arith.mulf %93, %94 : vector<1x8x8xf32>
    %cst_39 = arith.constant dense<0xFF800000> : vector<1x8xf32>
    %96 = vector.multi_reduction <maximumf>, %95, %cst_39 [2] : vector<1x8x8xf32> to vector<1x8xf32>
    %97 = vector.shape_cast %96 : vector<1x8xf32> to vector<1x8x1xf32>
    %98 = vector.broadcast %97 : vector<1x8x1xf32> to vector<1x8x8xf32>
    %99 = arith.subf %95, %98 : vector<1x8x8xf32>
    %100 = math.exp %99 : vector<1x8x8xf32>
    %cst_40 = arith.constant dense<0.000000e+00> : vector<1x8xf32>
    %101 = vector.multi_reduction <add>, %100, %cst_40 [2] : vector<1x8x8xf32> to vector<1x8xf32>
    %102 = vector.shape_cast %101 : vector<1x8xf32> to vector<1x8x1xf32>
    %103 = tpu.reciprocal %102 {approx = true} : vector<1x8x1xf32> -> vector<1x8x1xf32>
    %104 = vector.broadcast %103 : vector<1x8x1xf32> to vector<1x8x8xf32>
    %105 = arith.mulf %100, %104 : vector<1x8x8xf32>
    %106 = vector.shape_cast %105 : vector<1x8x8xf32> to vector<1x1x64xf32>
    "tpu.trace_start"() <{level = 10 : i32, message = "bqk,bkd->bqd"}> : () -> ()
    %cst_41 = arith.constant dense<0.000000e+00> : vector<1x8x32xf32>
    %107 = tpu.matmul %105, %92, %cst_41 {dimension_numbers = #tpu.dot_dimension_numbers<[2], [1], [1], [2], [0, 0, 0, 1, 1, 2], [0], [0]>} : vector<1x8x8xf32>, vector<1x8x32xf32>, vector<1x8x32xf32> -> vector<1x8x32xf32>
    "tpu.trace_stop"() : () -> ()
    %108 = vector.shape_cast %107 : vector<1x8x32xf32> to vector<8x32xf32>
    %109 = tpu.concatenate %40, %62, %84, %106 in 2 : vector<1x1x64xf32>, vector<1x1x64xf32>, vector<1x1x64xf32>, vector<1x1x64xf32> -> vector<1x1x256xf32>
    %c0_42 = arith.constant 0 : index
    %c0_43 = arith.constant 0 : index
    %c0_44 = arith.constant 0 : index
    %110 = vector.load %arg15[%c0_42, %c0_43, %c0_44] : memref<1x1x256xf32, #tpu.memory_space<vmem>>, vector<1x1x256xf32>
    tpu.vector_store %arg15[%c0_42, %c0_43, %c0_44], %109 {strides = array<i32>} : memref<1x1x256xf32, #tpu.memory_space<vmem>>, vector<1x1x256xf32>,
    %111 = tpu.concatenate %42, %64, %86, %108 in 1 : vector<8x32xf32>, vector<8x32xf32>, vector<8x32xf32>, vector<8x32xf32> -> vector<8x128xf32>
    %c0_45 = arith.constant 0 : index
    %c0_46 = arith.constant 0 : index
    %112 = vector.load %arg10[%c0_45, %c0_46] : memref<128x128xf32, #tpu.memory_space<vmem>>, vector<128x128xf32>
    %cst_47 = arith.constant dense<0.000000e+00> : vector<8x128xf32>
    %113 = tpu.matmul %111, %112, %cst_47 {dimension_numbers = #tpu.dot_dimension_numbers<[1], [0], [0], [1], [0, 0, 1, 1], [], []>} : vector<8x128xf32>, vector<128x128xf32>, vector<8x128xf32> -> vector<8x128xf32>
    %c0_48 = arith.constant 0 : index
    %c0_49 = arith.constant 0 : index
    %114 = vector.load %arg11[%c0_48, %c0_49] : memref<1x128xf32, #tpu.memory_space<vmem>>, vector<1x128xf32>
    %115 = vector.broadcast %114 : vector<1x128xf32> to vector<8x128xf32>
    %116 = arith.addf %113, %115 : vector<8x128xf32>
    %117 = arith.addf %116, %1 : vector<8x128xf32>
    %118 = tpu.iota {dimensions = array<i32: 1>} : vector<8x128xi32>
    %c116_i32 = arith.constant 116 : i32
    %119 = vector.broadcast %c116_i32 : i32 to vector<8x128xi32>
    %120 = arith.cmpi slt, %118, %119 : vector<8x128xi32>
    %cst_50 = arith.constant 0.000000e+00 : f32
    %121 = vector.broadcast %cst_50 : f32 to vector<8x128xf32>
    %122 = arith.select %120, %117, %121 : vector<8x128xi1>, vector<8x128xf32>
    %cst_51 = arith.constant dense<0.000000e+00> : vector<8xf32>
    %123 = vector.multi_reduction <add>, %122, %cst_51 [1] : vector<8x128xf32> to vector<8xf32>
    %124 = vector.shape_cast %123 : vector<8xf32> to vector<8x1xf32>
    %cst_52 = arith.constant 8.620690e-03 : f32
    %125 = vector.broadcast %cst_52 : f32 to vector<8x1xf32>
    %126 = arith.mulf %124, %125 : vector<8x1xf32>
    %127 = vector.broadcast %126 : vector<8x1xf32> to vector<8x128xf32>
    %128 = arith.subf %117, %127 : vector<8x128xf32>
    %cst_53 = arith.constant 0.000000e+00 : f32
    %129 = vector.broadcast %cst_53 : f32 to vector<8x128xf32>
    %130 = arith.select %120, %128, %129 : vector<8x128xi1>, vector<8x128xf32>
    %131 = arith.mulf %130, %130 : vector<8x128xf32>
    %cst_54 = arith.constant dense<0.000000e+00> : vector<8xf32>
    %132 = vector.multi_reduction <add>, %131, %cst_54 [1] : vector<8x128xf32> to vector<8xf32>
    %133 = vector.shape_cast %132 : vector<8xf32> to vector<8x1xf32>
    %cst_55 = arith.constant 8.620690e-03 : f32
    %134 = vector.broadcast %cst_55 : f32 to vector<8x1xf32>
    %135 = arith.mulf %133, %134 : vector<8x1xf32>
    %cst_56 = arith.constant 9.99999974E-6 : f32
    %136 = vector.broadcast %cst_56 : f32 to vector<8x1xf32>
    %137 = arith.addf %135, %136 : vector<8x1xf32>
    %138 = math.rsqrt %137 : vector<8x1xf32>
    %139 = vector.broadcast %138 : vector<8x1xf32> to vector<8x128xf32>
    %140 = arith.mulf %128, %139 : vector<8x128xf32>
    %c0_57 = arith.constant 0 : index
    %c0_58 = arith.constant 0 : index
    %141 = vector.load %arg12[%c0_57, %c0_58] : memref<1x128xf32, #tpu.memory_space<vmem>>, vector<1x128xf32>
    %142 = vector.broadcast %141 : vector<1x128xf32> to vector<8x128xf32>
    %143 = arith.mulf %140, %142 : vector<8x128xf32>
    %c0_59 = arith.constant 0 : index
    %c0_60 = arith.constant 0 : index
    %144 = vector.load %arg13[%c0_59, %c0_60] : memref<1x128xf32, #tpu.memory_space<vmem>>, vector<1x128xf32>
    %145 = vector.broadcast %144 : vector<1x128xf32> to vector<8x128xf32>
    %146 = arith.addf %143, %145 : vector<8x128xf32>
    %147 = vector.shape_cast %146 : vector<8x128xf32> to vector<1x8x128xf32>
    %c0_61 = arith.constant 0 : index
    %c0_62 = arith.constant 0 : index
    %c0_63 = arith.constant 0 : index
    %148 = vector.load %arg14[%c0_61, %c0_62, %c0_63] : memref<1x8x128xf32, #tpu.memory_space<vmem>>, vector<1x8x128xf32>
    tpu.vector_store %arg14[%c0_61, %c0_62, %c0_63], %147 {strides = array<i32>} : memref<1x8x128xf32, #tpu.memory_space<vmem>>, vector<1x8x128xf32>,
    return
  }
  func.func @transform_0(%arg0: i32) -> (i32, i32, i32) {
    %c0_i32 = arith.constant 0 : i32
    %c0_i32_0 = arith.constant 0 : i32
    %c0_i32_1 = arith.constant 0 : i32
    return %arg0, %c0_i32, %c0_i32_0 : i32, i32, i32
  }
  func.func @transform_1(%arg0: i32) -> (i32, i32, i32) {
    %c0_i32 = arith.constant 0 : i32
    %c0_i32_0 = arith.constant 0 : i32
    %c0_i32_1 = arith.constant 0 : i32
    return %arg0, %c0_i32, %c0_i32_0 : i32, i32, i32
  }
  func.func @transform_2(%arg0: i32) -> (i32, i32, i32) {
    %c0_i32 = arith.constant 0 : i32
    %c0_i32_0 = arith.constant 0 : i32
    %c0_i32_1 = arith.constant 0 : i32
    return %arg0, %c0_i32, %c0_i32_0 : i32, i32, i32
  }
  func.func @transform_3(%arg0: i32) -> (i32, i32) {
    %c0_i32 = arith.constant 0 : i32
    %c0_i32_0 = arith.constant 0 : i32
    %c0_i32_1 = arith.constant 0 : i32
    return %c0_i32, %c0_i32_0 : i32, i32
  }
  func.func @transform_4(%arg0: i32) -> (i32, i32) {
    %c0_i32 = arith.constant 0 : i32
    %c0_i32_0 = arith.constant 0 : i32
    %c0_i32_1 = arith.constant 0 : i32
    return %c0_i32, %c0_i32_0 : i32, i32
  }
  func.func @transform_5(%arg0: i32) -> (i32, i32) {
    %c0_i32 = arith.constant 0 : i32
    %c0_i32_0 = arith.constant 0 : i32
    %c0_i32_1 = arith.constant 0 : i32
    return %c0_i32, %c0_i32_0 : i32, i32
  }
  func.func @transform_6(%arg0: i32) -> (i32, i32) {
    %c0_i32 = arith.constant 0 : i32
    %c0_i32_0 = arith.constant 0 : i32
    %c0_i32_1 = arith.constant 0 : i32
    return %c0_i32, %c0_i32_0 : i32, i32
  }
  func.func @transform_7(%arg0: i32) -> (i32, i32) {
    %c0_i32 = arith.constant 0 : i32
    %c0_i32_0 = arith.constant 0 : i32
    %c0_i32_1 = arith.constant 0 : i32
    return %c0_i32, %c0_i32_0 : i32, i32
  }
  func.func @transform_8(%arg0: i32) -> (i32, i32) {
    %c0_i32 = arith.constant 0 : i32
    %c0_i32_0 = arith.constant 0 : i32
    %c0_i32_1 = arith.constant 0 : i32
    return %c0_i32, %c0_i32_0 : i32, i32
  }
  func.func @transform_9(%arg0: i32) -> (i32, i32) {
    %c0_i32 = arith.constant 0 : i32
    %c0_i32_0 = arith.constant 0 : i32
    %c0_i32_1 = arith.constant 0 : i32
    return %c0_i32, %c0_i32_0 : i32, i32
  }
  func.func @transform_10(%arg0: i32) -> (i32, i32) {
    %c0_i32 = arith.constant 0 : i32
    %c0_i32_0 = arith.constant 0 : i32
    %c0_i32_1 = arith.constant 0 : i32
    return %c0_i32, %c0_i32_0 : i32, i32
  }
  func.func @transform_11(%arg0: i32) -> (i32, i32) {
    %c0_i32 = arith.constant 0 : i32
    %c0_i32_0 = arith.constant 0 : i32
    %c0_i32_1 = arith.constant 0 : i32
    return %c0_i32, %c0_i32_0 : i32, i32
  }
  func.func @transform_12(%arg0: i32) -> (i32, i32) {
    %c0_i32 = arith.constant 0 : i32
    %c0_i32_0 = arith.constant 0 : i32
    %c0_i32_1 = arith.constant 0 : i32
    return %c0_i32, %c0_i32_0 : i32, i32
  }
  func.func @transform_13(%arg0: i32) -> (i32, i32, i32) {
    %c0_i32 = arith.constant 0 : i32
    %c0_i32_0 = arith.constant 0 : i32
    %c0_i32_1 = arith.constant 0 : i32
    return %arg0, %c0_i32, %c0_i32_0 : i32, i32, i32
  }
  func.func @transform_14(%arg0: i32) -> (i32, i32, i32) {
    %c0_i32 = arith.constant 0 : i32
    %c0_i32_0 = arith.constant 0 : i32
    %c0_i32_1 = arith.constant 0 : i32
    return %arg0, %c0_i32, %c0_i32_0 : i32, i32, i32
  }
}

</mosaic_0001>

<bundles_post_ra>
// kernel: multi_head_attention.1
= control target key start
LH: loop header
LB: loop body
LE: loop exit
PB: predicated region body
PF: predicated region fallthrough
CT: control target
= control target key end

     0   :  { %s3333_s0 = inlined_call_operand.vmem [shape: f32[2,8,128], index: 0, kind: input, shape index: {}]   ;;  %s3334_s1 = inlined_call_operand.vmem [shape: f32[2,8,128], index: 1, kind: input, shape index: {}]   ;;  %s3335_s2 = inlined_call_operand.vmem [shape: f32[2,8,128], index: 2, kind: input, shape index: {}]   ;;  %s3336_s3 = inlined_call_operand.vmem [shape: f32[128,128], index: 3, kind: input, shape index: {}]   ;;  %s3337_s4 = inlined_call_operand.vmem [shape: f32[1,128], index: 4, kind: input, shape index: {}]   ;;  %s3338_s5 = inlined_call_operand.vmem [shape: f32[128,128], index: 5, kind: input, shape index: {}]   ;;  %s3339_s6 = inlined_call_operand.vmem [shape: f32[1,128], index: 6, kind: input, shape index: {}]   ;;  %s3340_s7 = inlined_call_operand.vmem [shape: f32[128,128], index: 7, kind: input, shape index: {}]   ;;  %s3341_s8 = inlined_call_operand.vmem [shape: f32[1,128], index: 8, kind: input, shape index: {}]   ;;  %s3342_s9 = inlined_call_operand.vmem [shape: f32[128,128], index: 9, kind: input, shape index: {}]   ;;  %s3343_s10 = inlined_call_operand.vmem [shape: f32[1,128], index: 10, kind: input, shape index: {}]   ;;  %s3344_s11 = inlined_call_operand.vmem [shape: f32[1,128], index: 11, kind: input, shape index: {}]   ;;  %s3345_s12 = inlined_call_operand.vmem [shape: f32[1,128], index: 12, kind: input, shape index: {}]   ;;  %s3346_s13 = inlined_call_operand.hbm [shape: f32[2,8,128], index: 13, kind: output, shape index: {0}]   ;;  %s3347_s14 = inlined_call_operand.vmem [shape: f32[2,1,256], index: 14, kind: output, shape index: {1}]  }
   0x1   :  { %3357 = sst [smem:[#allocation8_spill]] %s3333_s0 }
   0x2   :  { %3358 = sst [smem:[#allocation9_spill]] %s3334_s1 }
   0x3   :  { %20 = vsyncpa [#allocation3], 0 }
   0x4   :  { %22 = vsyncpa [#allocation3 + $0x1], 0  ;;  %s2716_s29 = smov 0   ;;  %s2718_s30 = smov 0  }
   0x5   :  { %s2720_s15 = smov 0   ;;  %s2722_s16 = smov 0  }
   0x6 LB: > { %3359 = sst [smem:[#allocation5_spill]] %s2619_s15  ;;  %s2737_s17 = sadd.s32 4294967295, %s2623_s16   ;;  %s2623_s16 = sphi %s2722_s16, %s3369_s16   ;;  %s2619_s15 = sphi %s2720_s15, %s3371_s15   ;;  %s2615_s30 = sphi %s2718_s30, %s3373_s30   ;;  %s2611_s29 = sphi %s2716_s29, %s3372_s29  }
   0x7   : > { %s2098_s18 = sadd.s32 4294967294, %s2623_s16   ;;  %s2741_s19 = sadd.s32 1, %s2623_s16  }
   0x8   : > { %3360 = sst [smem:[#allocation6_spill]] %s2741_s19  ;;  %s323_s20 = sadd.s32 1, %s2619_s15 }
   0x9   : > { %s320_s21 = ssub.s32 %s2623_s16, %s2741_s19  ;;  %p333_p0 = scmp.ne.s32.totalorder %s2619_s15, %s2615_s30 }
   0xa   : > { %p321_p1 = scmp.eq.s32.totalorder %s320_s21, 0  ;;  %p334_p2 = scmp.eq.s32.totalorder %s2737_s17, 1 }
   0xb   : > { %p339_p3 = scmp.ne.s32.totalorder %s2615_s30, %s2611_s29  ;;  %p340_p4 = scmp.eq.s32.totalorder %s2098_s18, 1 }
   0xc   : > { %s2752_s22 = scalar_select %p321_p1, %s2619_s15, %s323_s20  }
   0xd   : > { %p2754_p5 = por %p334_p2, %p333_p0  ;;  %p2758_p6 = por %p340_p4, %p339_p3 }
   0xe   : > { %3361 = sst [smem:[#allocation7_spill]] %s2752_s22  ;;  %p2101_p7 = scmp.ge.s32.totalorder %s2623_s16, 1 }
   0xf   : > { %p435_p8 = scmp.lt.s32.totalorder %s2623_s16, 3 }
  0x11   : > { %p436_p9 = pnand %p2101_p7, %p435_p8 }
  0x12   : > { %v604_v0 = vld [vmem:[%s3338_s5] sm:$0xff] (!%p436_p9)  ;;  %v605_v1 = vld [vmem:[%s3338_s5 + $0x8] sm:$0xff] (!%p436_p9)  ;;  %v2625_v3 = vmov (!%p436_p9), 0.0|0.0   ;;  %v606_v6 = vld [vmem:[%s3338_s5 + $0x10] sm:$0xff] (!%p436_p9)  ;;  %vm2626_vm0 = vmmov (!%p436_p9), 0   ;;  %v2627_v11 = vmov (!%p436_p9), 0.0  }
  0x13   : > { %439 = sbr.rel (%p436_p9) target bundleno = 3264 (0xcc0), region = 72  ;;  %v511_v2 = vld [vmem:[%s3336_s3] sm:$0xff] (!%p436_p9)  ;;  %2417 = vmatprep.subr.bf16.mxu1 (!%p436_p9), %v2625_v3  ;;  %v2418_v4 = vpack.c.bf16 (!%p436_p9), %v605_v1, %v604_v0  ;;  %2393 = vmatprep.subr.bf16.mxu0 (!%p436_p9), %v2625_v3  ;;  %v512_v5 = vld [vmem:[%s3336_s3 + $0x8] sm:$0xff] (!%p436_p9)  ;;  %v607_v7 = vld [vmem:[%s3338_s5 + $0x18] sm:$0xff] (!%p436_p9)  ;;  %p492_p10 = scmp.lt.s32.totalorder (!%p436_p9), %s2737_s17, 1  ;;  %vm790_vm1 = vcmask (!%p436_p9), 261120  }
  0x14   : > { %v2394_v8 = vpack.c.bf16 (!%p436_p9), %v512_v5, %v511_v2  ;;  %v513_v9 = vld [vmem:[%s3336_s3 + $0x10] sm:$0xff] (!%p436_p9)  ;;  %v514_v10 = vld [vmem:[%s3336_s3 + $0x18] sm:$0xff] (!%p436_p9)  ;;  %2280 = vmatprep.mubr.msk.f32.mxu1 (!%p436_p9), %vm2626_vm0, %v2627_v11  ;;  %2245 = vmatprep.mubr.msk.f32.mxu0 (!%p436_p9), %vm2626_vm0, %v2627_v11  ;;  %v2421_v12 = vpack.c.bf16 (!%p436_p9), %v607_v7, %v606_v6  ;;  %v608_v14 = vld [vmem:[%s3338_s5 + $0x20] sm:$0xff] (!%p436_p9)  ;;  %s3364_s1 = sld [smem:[#allocation9_spill]] (!%p436_p9)  ;;  %s3365_s0 = sld [smem:[#allocation8_spill]] (!%p436_p9)  ;;  %vm868_vm2 = vcmask (!%p436_p9), 64512  }
  0x15   : > { %2419 = vmatpush3.bf16.msra.mxu1 (!%p436_p9), %v2418_v4  ;;  %v2397_v13 = vpack.c.bf16 (!%p436_p9), %v514_v10, %v513_v9  ;;  %v609_v15 = vld [vmem:[%s3338_s5 + $0x28] sm:$0xff] (!%p436_p9)  ;;  %v515_v16 = vld [vmem:[%s3336_s3 + $0x20] sm:$0xff] (!%p436_p9)  ;;  %v610_v20 = vld [vmem:[%s3338_s5 + $0x30] sm:$0xff] (!%p436_p9)  ;;  %s3366_s25 = smov (!%p436_p9), 96   ;;  %s3353_s26 = smov (!%p436_p9), 64   ;;  %vm1801_vm3 = vcmask (!%p436_p9), 523264  }
  0x16   : > { %2395 = vmatpush3.bf16.msra.mxu0 (!%p436_p9), %v2394_v8  ;;  %2420 = vmatprep.subr.bf16.mxu1 (!%p436_p9), %v2625_v3  ;;  %v516_v17 = vld [vmem:[%s3336_s3 + $0x28] sm:$0xff] (!%p436_p9)  ;;  %v2424_v18 = vpack.c.bf16 (!%p436_p9), %v609_v15, %v608_v14  ;;  %v611_v21 = vld [vmem:[%s3338_s5 + $0x38] sm:$0xff] (!%p436_p9)  ;;  %v517_v22 = vld [vmem:[%s3336_s3 + $0x30] sm:$0xff] (!%p436_p9)  ;;  %s2636_s15 = smov (!%p436_p9), 40   ;;  %s2637_s28 = smov (!%p436_p9), 48   ;;  %vm1841_vm4 = vcmask (!%p436_p9), 785408  }
  0x17   : > { %2396 = vmatprep.subr.bf16.mxu0 (!%p436_p9), %v2625_v3  ;;  %v2400_v19 = vpack.c.bf16 (!%p436_p9), %v516_v17, %v515_v16  ;;  %v518_v23 = vld [vmem:[%s3336_s3 + $0x38] sm:$0xff] (!%p436_p9)  ;;  %v2427_v24 = vpack.c.bf16 (!%p436_p9), %v611_v21, %v610_v20  ;;  %v612_v26 = vld [vmem:[%s3338_s5 + $0x40] sm:$0xff] (!%p436_p9)  ;;  %v613_v27 = vld [vmem:[%s3338_s5 + $0x48] sm:$0xff] (!%p436_p9)  ;;  %s2638_s18 = smov (!%p436_p9), 56   ;;  %vm958_vm6 = vcmask (!%p436_p9), 130048   ;;  %vm960_vm7 = vcmask (!%p436_p9), 195584  }
  0x18   : > { %v2403_v25 = vpack.c.bf16 (!%p436_p9), %v518_v23, %v517_v22  ;;  %v519_v28 = vld [vmem:[%s3336_s3 + $0x40] sm:$0xff] (!%p436_p9)  ;;  %v520_v29 = vld [vmem:[%s3336_s3 + $0x48] sm:$0xff] (!%p436_p9)  ;;  %v2430_v30 = vpack.c.bf16 (!%p436_p9), %v613_v27, %v612_v26  ;;  %v614_v32 = vld [vmem:[%s3338_s5 + $0x50] sm:$0xff] (!%p436_p9)  ;;  %vm963_vm8 = vcmask (!%p436_p9), 326656   ;;  %vm965_vm9 = vcmask (!%p436_p9), 392192  }
  0x19   : > { %2422 = vmatpush3.bf16.msra.mxu1 (!%p436_p9), %v2421_v12  ;;  %v2406_v31 = vpack.c.bf16 (!%p436_p9), %v520_v29, %v519_v28  ;;  %v615_v33 = vld [vmem:[%s3338_s5 + $0x58] sm:$0xff] (!%p436_p9)  ;;  %v521_v34 = vld [vmem:[%s3336_s3 + $0x50] sm:$0xff] (!%p436_p9)  ;;  %v616_v38 = vld [vmem:[%s3338_s5 + $0x60] sm:$0xff] (!%p436_p9)  ;;  %vm967_vm10 = vcmask (!%p436_p9), 457728  }
  0x1a   : > { %2398 = vmatpush3.bf16.msra.mxu0 %v2397_v13  ;;  %2423 = vmatprep.subr.bf16.mxu1 %v2625_v3  ;;  %v522_v35 = vld [vmem:[%s3336_s3 + $0x58] sm:$0xff]  ;;  %v2433_v36 = vpack.c.bf16 %v615_v33, %v614_v32  ;;  %v617_v39 = vld [vmem:[%s3338_s5 + $0x68] sm:$0xff]  ;;  %v523_v40 = vld [vmem:[%s3336_s3 + $0x60] sm:$0xff]  ;;  %s2866_s22 = scalar_select %p492_p10, %s2737_s17, 1 }
  0x1b   : > { %2399 = vmatprep.subr.bf16.mxu0 %v2625_v3  ;;  %v2409_v37 = vpack.c.bf16 %v522_v35, %v521_v34  ;;  %v524_v41 = vld [vmem:[%s3336_s3 + $0x68] sm:$0xff]  ;;  %v2436_v42 = vpack.c.bf16 %v617_v39, %v616_v38  ;;  %v618_v44 = vld [vmem:[%s3338_s5 + $0x70] sm:$0xff]  ;;  %v619_v45 = vld [vmem:[%s3338_s5 + $0x78] sm:$0xff] }
  0x1c   : > { %v2412_v43 = vpack.c.bf16 %v524_v41, %v523_v40  ;;  %v525_v46 = vld [vmem:[%s3336_s3 + $0x70] sm:$0xff]  ;;  %v526_v47 = vld [vmem:[%s3336_s3 + $0x78] sm:$0xff]  ;;  %s2883_s20 = sshll.u32 %s2866_s22, 3  ;;  %v2439_v48 = vpack.c.bf16 %v619_v45, %v618_v44  ;;  %v2108_v52 = vld [vmem:[%s3339_s6] ss:$0 sm:$0xff] }
  0x1d   : > { %2425 = vmatpush3.bf16.msra.mxu1 %v2424_v18  ;;  %v2415_v49 = vpack.c.bf16 %v526_v47, %v525_v46  ;;  %s499_s19 = scalar_lea.vmem %s3364_s1, %s2883_s20  ;;  %s495_s27 = scalar_lea.vmem %s3365_s0, %s2883_s20  ;;  %v2107_v53 = vld [vmem:[%s3337_s4] ss:$0 sm:$0xff]  ;;  %v698_v61 = vld [vmem:[%s3340_s7 + $0x8] sm:$0xff]  ;;  %v699_v62 = vld [vmem:[%s3340_s7 + $0x10] sm:$0xff] }
  0x1e   : > { %2401 = vmatpush3.bf16.msra.mxu0 %v2400_v19  ;;  %2426 = vmatprep.subr.bf16.mxu1 %v2625_v3  ;;  %v509_v50 = vld [vmem:[%s499_s19] sm:$0xff]  ;;  %s3351_s19 = smov 96   ;;  %v700_v0 = vld [vmem:[%s3340_s7 + $0x18] sm:$0xff]  ;;  %v702_v4 = vld [vmem:[%s3340_s7 + $0x28] sm:$0xff] }
  0x1f   : > { %2402 = vmatprep.subr.bf16.mxu0 %v2625_v3  ;;  %v2895_v51 = vld [vmem:[%s495_s27] sm:$0xff]  ;;  %v2445_v1 = vpack.c.bf16 %v700_v0, %v699_v62  ;;  %v703_v6 = vld [vmem:[%s3340_s7 + $0x30] sm:$0xff]  ;;  %v704_v7 = vld [vmem:[%s3340_s7 + $0x38] sm:$0xff]  ;;  %s3355_s27 = smov 32  }
  0x20   : > { %v697_v60 = vld [vmem:[%s3340_s7] sm:$0xff]  ;;  %v2451_v8 = vpack.c.bf16 %v704_v7, %v703_v6  ;;  %v706_v10 = vld [vmem:[%s3340_s7 + $0x48] sm:$0xff]  ;;  %v707_v13 = vld [vmem:[%s3340_s7 + $0x50] sm:$0xff] }
  0x21   : > { %2428 = vmatpush3.bf16.msra.mxu1 %v2427_v24  ;;  %v2442_v63 = vpack.c.bf16 %v698_v61, %v697_v60  ;;  %v701_v2 = vld [vmem:[%s3340_s7 + $0x20] sm:$0xff]  ;;  %v708_v14 = vld [vmem:[%s3340_s7 + $0x58] sm:$0xff]  ;;  %v710_v17 = vld [vmem:[%s3340_s7 + $0x68] sm:$0xff] }
  0x22   : > { %2404 = vmatpush3.bf16.msra.mxu0 %v2403_v25  ;;  %2429 = vmatprep.subr.bf16.mxu1 %v2625_v3  ;;  %v2448_v5 = vpack.c.bf16 %v702_v4, %v701_v2  ;;  %v705_v9 = vld [vmem:[%s3340_s7 + $0x40] sm:$0xff]  ;;  %v2457_v15 = vpack.c.bf16 %v708_v14, %v707_v13  ;;  %v711_v19 = vld [vmem:[%s3340_s7 + $0x70] sm:$0xff]  ;;  %v712_v20 = vld [vmem:[%s3340_s7 + $0x78] sm:$0xff] }
  0x23   : > { %2405 = vmatprep.subr.bf16.mxu0 %v2625_v3  ;;  %v2454_v12 = vpack.c.bf16 %v706_v10, %v705_v9  ;;  %v709_v16 = vld [vmem:[%s3340_s7 + $0x60] sm:$0xff]  ;;  %v2463_v21 = vpack.c.bf16 %v712_v20, %v711_v19 }
  0x24   : > { %v2460_v18 = vpack.c.bf16 %v710_v17, %v709_v16  ;;  %v2109_v32 = vld [vmem:[%s3341_s8] ss:$0 sm:$0xff] }
  0x25   : > { %2431 = vmatpush3.bf16.msra.mxu1 %v2430_v30 }
  0x26   : > { %2407 = vmatpush3.bf16.msra.mxu0 %v2406_v31  ;;  %2432 = vmatprep.subr.bf16.mxu1 %v2625_v3 }
  0x27   : > { %2408 = vmatprep.subr.bf16.mxu0 %v2625_v3 }
  0x29   : > { %2434 = vmatpush3.bf16.msra.mxu1 %v2433_v36 }
  0x2a   : > { %2410 = vmatpush3.bf16.msra.mxu0 %v2409_v37  ;;  %2435 = vmatprep.subr.bf16.mxu1 %v2625_v3 }
  0x2b   : > { %2411 = vmatprep.subr.bf16.mxu0 %v2625_v3 }
  0x2d   : > { %2437 = vmatpush3.bf16.msra.mxu1 %v2436_v42 }
  0x2e   : > { %2413 = vmatpush3.bf16.msra.mxu0 %v2412_v43  ;;  %2438 = vmatprep.subr.bf16.mxu1 %v2625_v3 }
  0x2f   : > { %2414 = vmatprep.subr.bf16.mxu0 %v2625_v3 }
  0x31   : > { %2440 = vmatpush3.bf16.msra.mxu1 %v2439_v48 }
  0x32   : > { %2416 = vmatpush3.bf16.msra.mxu0 %v2415_v49  ;;  %2318 = vmatprep.subr.mxu1 %v2627_v11 }
  0x33   : > { %2441 = vmatprep.subr.bf16.mxu0 %v2625_v3 }
  0x34   : > { %2281 = vmatmul.mubr.f32.vlgmr.msra.gmra.mrb[0].mxu1 %v509_v50 }
  0x35   : > { %2246 = vmatmul.mubr.f32.vlgmr.msra.gmra.mrb[0].mxu0 %v2895_v51  ;;  %2320 = vmatprep.mubr.msk.f32.mxu1 %vm2626_vm0, %v2627_v11 }
  0x36   : > { %2315 = vmatprep.mubr.msk.f32.mxu0 %vm2626_vm0, %v2627_v11  ;;  %2443 = vmatpush3.bf16.msra.mxu0 %v2442_v63 }
  0x37   : > { %2444 = vmatprep.subr.bf16.mxu0 %v2625_v3 }
  0x3a   : > { %2446 = vmatpush3.bf16.msra.mxu0 %v2445_v1 }
  0x3b   : > { %2447 = vmatprep.subr.bf16.mxu0 %v2625_v3 }
  0x3e   : > { %2449 = vmatpush3.bf16.msra.mxu0 %v2448_v5 }
  0x3f   : > { %2450 = vmatprep.subr.bf16.mxu0 %v2625_v3 }
  0x42   : > { %2452 = vmatpush3.bf16.msra.mxu0 %v2451_v8 }
  0x43   : > { %2453 = vmatprep.subr.bf16.mxu0 %v2625_v3 }
  0x46   : > { %2455 = vmatpush3.bf16.msra.mxu0 %v2454_v12 }
  0x47   : > { %2456 = vmatprep.subr.bf16.mxu0 %v2625_v3 }
  0x4a   : > { %2458 = vmatpush3.bf16.msra.mxu0 %v2457_v15 }
  0x4b   : > { %2459 = vmatprep.subr.bf16.mxu0 %v2625_v3 }
  0x4e   : > { %2461 = vmatpush3.bf16.msra.mxu0 %v2460_v18 }
  0x4f   : > { %2462 = vmatprep.subr.bf16.mxu0 %v2625_v3 }
  0x52   : > { %2464 = vmatpush3.bf16.msra.mxu0 %v2463_v21 }
  0x53   : > { %2465 = vmatprep.subr.bf16.mxu0 %v2625_v3 }
 0x107   : > { %v693_v54 = vpop.f32.mrb[0].mxu1 }
 0x108   : > { %v2910_v55 = vadd.f32 %v2108_v52, %v693_v54  ;;  %v2282_v56 = vpop.f32.mrb[1].mxu1  ;;  %v600_v57 = vpop.f32.mrb[0].mxu0 }
 0x109   : > { %v2912_v58 = vadd.f32 %v2107_v53, %v600_v57  ;;  %v2247_v59 = vpop.f32.mrb[1].mxu0 }
 0x10a   : > { %1044 = vrot.lane.b32.xlu1 %v2910_v55, %s3351_s19  ;;  %2319 = vmatpush3.xpose.msk.msra.mxu1 %vm790_vm1, %v2910_v55 }
 0x10b   : > { %2323 = vmatprep.subr.mxu1 %v2627_v11 }
 0x10d   : > { %2321 = vmatmul.mubr.msk.f32.vlgmr.msra.gmra.mrb[2].mxu1 %vm790_vm1, %v2912_v58 }
 0x10e   : > { %1042 = vrot.lane.b32.xlu1 %v2912_v58, %s3351_s19  ;;  %2325 = vmatprep.mubr.msk.f32.mxu1 %vm2626_vm0, %v2627_v11  ;;  %s503_s19 = scalar_lea.vmem %s3335_s2, %s2883_s20  ;;  %s2633_s20 = smov 8  }
 0x10f   : > { %v510_v22 = vld [vmem:[%s503_s19] sm:$0xff]  ;;  %s3368_s19 = smov 64  }
 0x110   : > { %2316 = vmatmul.mubr.f32.vlgmr.msra.gmra.mrb[2].mxu0 %v510_v22 }
 0x111   : > { %2390 = vmatprep.mubr.msk.f32.mxu0 %vm2626_vm0, %v2627_v11 }
 0x17c   : > { %v1045_v38 = vpop.permute.xlu1 %1044 }
 0x180   : > { %v1043_v40 = vpop.permute.xlu1 %1042 }
 0x1e0   : > { %v863_v23 = vpop.f32.mrb[2].mxu1 }
 0x1e1   : > { %v867_v24 = vmul.f32 0.17677669, %v863_v23  ;;  %v2322_v25 = vpop.f32.mrb[3].mxu1 }
 0x1e3   : > { %v869_v26 = vsel %vm868_vm2, %v867_v24, -inf  ;;  %v786_v33 = vpop.f32.mrb[2].mxu0 }
 0x1e4   : > { %870 = vmax.xlane.f32.xlu0 %v869_v26  ;;  %v2992_v34 = vadd.f32 %v2109_v32, %v786_v33  ;;  %v2317_v35 = vpop.f32.mrb[3].mxu0  ;;  %v1845_v32 = vld [vmem:[%s3342_s9 + $0x10] sm:$0xff]  ;;  %v1846_v33 = vld [vmem:[%s3342_s9 + $0x18] sm:$0xff] }
 0x1e5   : > { %v1847_v35 = vld [vmem:[%s3342_s9 + $0x20] sm:$0xff] }
 0x1e6   : > { %2324 = vmatpush3.msra.mxu1 %v2992_v34 }
 0x1e7   : > { %2328 = vmatprep.subr.mxu1 %v2627_v11 }
 0x271   : > { %v871_v27 = vpop.xlane.xlu0 %870 }
 0x272   : > { %v872_v28 = vsub.f32 %v867_v24, %v871_v27 }
 0x274   : > { %v873_v29 = vmul.f32 1.442695, %v872_v28 }
 0x276   : > { %2543 = vpow2.f32 %v873_v29  ;;  %v1843_v29 = vld [vmem:[%s3342_s9] sm:$0xff] }
 0x280   : > { %v2544_v30 = vpop.eup %2543 }
 0x281   : > { %v875_v31 = vsel %vm868_vm2, %v2544_v30, 0.0 }
 0x282   : > { %876 = vadd.xlane.f32.xlu0 %v875_v31 }
 0x30f   : > { %v877_v36 = vpop.xlane.xlu0 %876 }
 0x310   : > { %2545 = vrcp.f32 %v877_v36  ;;  %v1848_v36 = vld [vmem:[%s3342_s9 + $0x28] sm:$0xff] }
 0x31a   : > { %v2546_v37 = vpop.eup %2545 }
 0x31b   : > { %v2996_v39 = vmul.f32 %v2546_v37, %v2544_v30  ;;  %v1844_v30 = vld [vmem:[%s3342_s9 + $0x8] sm:$0xff]  ;;  %v2472_v37 = vpack.c.bf16 %v1848_v36, %v1847_v35 }
 0x31c   : > { %v2466_v31 = vpack.c.bf16 %v1844_v30, %v1843_v29 }
 0x31d   : > { %2326 = vmatmul.mubr.msk.f32.vlgmr.msra.gmra.mrb[4].mxu1 %vm868_vm2, %v2996_v39  ;;  %v880_v35 = vcombine.high %v2996_v39, %v2627_v11 }
 0x31e   : > { %2329 = vmatpush3.xpose.msk.msra.mxu1 %vm790_vm1, %v1045_v38  ;;  %2330 = vmatprep.mubr.msk.f32.mxu1 %vm2626_vm0, %v2627_v11  ;;  %v1849_v38 = vld [vmem:[%s3342_s9 + $0x30] sm:$0xff] }
 0x31f   : > { %2333 = vmatprep.subr.mxu1 %v2627_v11  ;;  %2467 = vmatpush3.bf16.msra.mxu0 %v2466_v31 }
 0x320   : > { %2468 = vmatprep.subr.bf16.mxu0 %v2625_v3 }
 0x321   : > { %2331 = vmatmul.mubr.msk.f32.vlgmr.msra.gmra.mrb[6].mxu1 %vm790_vm1, %v1043_v40  ;;  %v1850_v40 = vld [vmem:[%s3342_s9 + $0x38] sm:$0xff] }
 0x322   : > { %2335 = vmatprep.mubr.msk.f32.mxu1 %vm2626_vm0, %v2627_v11 }
 0x3f0   : > { %v3007_v41 = vpop.f32.mrb[4].mxu1 }
 0x3f1   : > { %v2327_v42 = vpop.f32.mrb[5].mxu1 }
 0x3f2   : > { %v2475_v42 = vpack.c.bf16 %v1850_v40, %v1849_v38 }
 0x3f4   : > { %v1116_v43 = vpop.f32.mrb[6].mxu1 }
 0x3f5   : > { %v1120_v44 = vmul.f32 0.17677669, %v1116_v43  ;;  %v2332_v45 = vpop.f32.mrb[7].mxu1  ;;  %v1851_v43 = vld [vmem:[%s3342_s9 + $0x40] sm:$0xff] }
 0x3f7   : > { %v1121_v46 = vsel %vm868_vm2, %v1120_v44, -inf }
 0x3f8   : > { %1122 = vmax.xlane.f32.xlu0 %v1121_v46  ;;  %v1853_v46 = vld [vmem:[%s3342_s9 + $0x50] sm:$0xff] }
 0x40e   : > { %1217 = vrot.lane.b32.xlu0 %v2992_v34, %s3366_s25 }
 0x412   : > { %1295 = vrot.lane.b32.xlu0 %v2910_v55, %s3353_s26 }
 0x416   : > { %1293 = vrot.lane.b32.xlu0 %v2912_v58, %s3353_s26 }
 0x485   : > { %v1123_v47 = vpop.xlane.xlu0 %1122 }
 0x486   : > { %v1124_v48 = vsub.f32 %v1120_v44, %v1123_v47  ;;  %v1852_v44 = vld [vmem:[%s3342_s9 + $0x48] sm:$0xff]  ;;  %v1854_v47 = vld [vmem:[%s3342_s9 + $0x58] sm:$0xff] }
 0x487   : > { %v2478_v45 = vpack.c.bf16 %v1852_v44, %v1851_v43 }
 0x488   : > { %v1125_v49 = vmul.f32 1.442695, %v1124_v48  ;;  %v2481_v48 = vpack.c.bf16 %v1854_v47, %v1853_v46 }
 0x489   : > { %v1218_v50 = vpop.permute.xlu0 %1217 }
 0x48a   : > { %2547 = vpow2.f32 %v1125_v49  ;;  %2334 = vmatpush3.msra.mxu1 %v1218_v50  ;;  %v1855_v49 = vld [vmem:[%s3342_s9 + $0x60] sm:$0xff]  ;;  %v1856_v50 = vld [vmem:[%s3342_s9 + $0x68] sm:$0xff] }
 0x48b   : > { %2338 = vmatprep.subr.mxu1 %v2627_v11 }
 0x48d   : > { %v1296_v57 = vpop.permute.xlu0 %1295 }
 0x491   : > { %v1294_v60 = vpop.permute.xlu0 %1293 }
 0x494   : > { %v2548_v52 = vpop.eup %2547 }
 0x495   : > { %v1127_v53 = vsel %vm868_vm2, %v2548_v52, 0.0 }
 0x496   : > { %1128 = vadd.xlane.f32.xlu1 %v1127_v53  ;;  %v1857_v53 = vld [vmem:[%s3342_s9 + $0x70] sm:$0xff] }
 0x4a7   : > { %1467 = vrot.lane.b32.xlu1 %v2992_v34, %s3353_s26 }
 0x4ab   : > { %1545 = vrot.lane.b32.xlu1 %v2910_v55, %s3355_s27 }
 0x523   : > { %v1129_v54 = vpop.xlane.xlu1 %1128 }
 0x524   : > { %2549 = vrcp.f32 %v1129_v54  ;;  %v1858_v54 = vld [vmem:[%s3342_s9 + $0x78] sm:$0xff] }
 0x527   : > { %v1468_v61 = vpop.permute.xlu1 %1467 }
 0x52b   : > { %v1546_v9 = vpop.permute.xlu1 %1545 }
 0x52e   : > { %v2550_v56 = vpop.eup %2549 }
 0x52f   : > { %v3022_v59 = vmul.f32 %v2550_v56, %v2548_v52  ;;  %v2484_v52 = vpack.c.bf16 %v1856_v50, %v1855_v49  ;;  %v2487_v56 = vpack.c.bf16 %v1858_v54, %v1857_v53 }
 0x531   : > { %2336 = vmatmul.mubr.msk.f32.vlgmr.msra.gmra.mrb[8].mxu1 %vm868_vm2, %v3022_v59 }
 0x532   : > { %2339 = vmatpush3.xpose.msk.msra.mxu1 %vm790_vm1, %v1296_v57  ;;  %2340 = vmatprep.mubr.msk.f32.mxu1 %vm2626_vm0, %v2627_v11  ;;  %v2631_v57 = vmov 1983009808  }
 0x533   : > { %2343 = vmatprep.subr.mxu1 %v2627_v11 }
 0x535   : > { %2341 = vmatmul.mubr.msk.f32.vlgmr.msra.gmra.mrb[10].mxu1 %vm790_vm1, %v1294_v60  ;;  %v882_v60 = vunpack.c.l.s4 %v2631_v57  ;;  %v2122_v57 = vld [vmem:[%s3343_s10] ss:$0 sm:$0xff] }
 0x536   : > { %2344 = vmatpush3.msra.mxu1 %v1468_v61  ;;  %2345 = vmatprep.mubr.msk.f32.mxu1 %vm2626_vm0, %v2627_v11  ;;  %v884_v61 = vlaneseq }
 0x537   : > { %2348 = vmatprep.subr.mxu1 %v2627_v11 }
 0x538   : > { %vm1824_vm11 = vcmp.lt.s32.totalorder %v884_v61, 256 }
 0x604   : > { %v1289_v55 = vpop.f32.mrb[8].mxu1 }
 0x605   : > { %v2337_v62 = vpop.f32.mrb[9].mxu1 }
 0x606   : > { %v3115_v62 = vshrl.u32 %v884_v61, 7 }
 0x608   : > { %v1367_v63 = vpop.f32.mrb[10].mxu1 }
 0x609   : > { %v1371_v0 = vmul.f32 0.17677669, %v1367_v63  ;;  %v2342_v1 = vpop.f32.mrb[11].mxu1  ;;  %v2632_v63 = vmov 1934713408  }
 0x60b   : > { %v1372_v2 = vsel %vm868_vm2, %v1371_v0, -inf }
 0x60c   : > { %1373 = vmax.xlane.f32.xlu0 %v1372_v2 }
 0x699   : > { %v1374_v4 = vpop.xlane.xlu0 %1373 }
 0x69a   : > { %v1375_v5 = vsub.f32 %v1371_v0, %v1374_v4  ;;  %v897_v0 = vunpack.c.l.s4 %v2632_v63 }
 0x69c   : > { %v1376_v6 = vmul.f32 1.442695, %v1375_v5  ;;  %v898_v2 = vunpack.c.0.s8 %v897_v0 }
 0x69e   : > { %2551 = vpow2.f32 %v1376_v6  ;;  %v3123_v5 = vsub.s32 %v898_v2, %v3115_v62 }
 0x6a8   : > { %v2552_v7 = vpop.eup %2551 }
 0x6a9   : > { %v1378_v8 = vsel %vm868_vm2, %v2552_v7, 0.0 }
 0x6aa   : > { %1379 = vadd.xlane.f32.xlu1 %v1378_v8 }
 0x6bb   : > { %1543 = vrot.lane.b32.xlu1 %v2912_v58, %s3355_s27 }
 0x737   : > { %v1380_v10 = vpop.xlane.xlu1 %1379 }
 0x738   : > { %2553 = vrcp.f32 %v1380_v10 }
 0x73b   : > { %v1544_v14 = vpop.permute.xlu1 %1543 }
 0x742   : > { %v2554_v12 = vpop.eup %2553 }
 0x743   : > { %v3038_v13 = vmul.f32 %v2554_v12, %v2552_v7 }
 0x745   : > { %2346 = vmatmul.mubr.msk.f32.vlgmr.msra.gmra.mrb[12].mxu1 %vm868_vm2, %v3038_v13  ;;  %v1383_v38 = vcombine.high %v3038_v13, %v2627_v11 }
 0x746   : > { %2349 = vmatpush3.xpose.msk.msra.mxu1 %vm790_vm1, %v1546_v9  ;;  %2350 = vmatprep.mubr.msk.f32.mxu1 %vm2626_vm0, %v2627_v11 }
 0x747   : > { %2353 = vmatprep.subr.mxu1 %v2627_v11 }
 0x749   : > { %2351 = vmatmul.mubr.msk.f32.vlgmr.msra.gmra.mrb[14].mxu1 %vm790_vm1, %v1544_v14 }
 0x74a   : > { %2355 = vmatprep.mubr.msk.f32.mxu1 %vm2626_vm0, %v2627_v11 }
 0x818   : > { %v1539_v58 = vpop.f32.mrb[12].mxu1 }
 0x819   : > { %v2347_v15 = vpop.f32.mrb[13].mxu1 }
 0x81c   : > { %v1617_v16 = vpop.f32.mrb[14].mxu1 }
 0x81d   : > { %v1621_v17 = vmul.f32 0.17677669, %v1617_v16  ;;  %v2352_v18 = vpop.f32.mrb[15].mxu1 }
 0x81f   : > { %v1622_v19 = vsel %vm868_vm2, %v1621_v17, -inf }
 0x820   : > { %1623 = vmax.xlane.f32.xlu0 %v1622_v19 }
 0x836   : > { %1717 = vrot.lane.b32.xlu0 %v2992_v34, %s3355_s27  ;;  %v2469_v34 = vpack.c.bf16 %v1846_v33, %v1845_v32 }
 0x838   : > { %2470 = vmatpush3.bf16.msra.mxu0 %v2469_v34 }
 0x839   : > { %2471 = vmatprep.subr.bf16.mxu0 %v2625_v3 }
 0x83a   : > { %1828 = vrot.lane.b32.xlu0 %v1289_v55, %s3355_s27  ;;  %v883_v55 = vunpack.c.0.s8 %v882_v60  ;;  %s3367_s27 = smov 32   ;;  %v1938_v60 = vand.u32 127, %v884_v61 }
 0x83c   : > { %2473 = vmatpush3.bf16.msra.mxu0 %v2472_v37  ;;  %v3118_v1 = vsub.s32 %v883_v55, %v3115_v62  ;;  %vm1939_vm5 = vcmp.lt.s32.totalorder %v1938_v60, 116 }
 0x83d   : > { %2474 = vmatprep.subr.bf16.mxu0 %v2625_v3 }
 0x83e   : > { %1832 = vrot.lane.b32.xlu0 %v1539_v58, %s3353_s26  ;;  %v1139_v4 = vrot.slane %v3022_v59, %v3118_v1  ;;  %s2634_s26 = smov 16   ;;  %v894_v37 = vrot.slane %v880_v35, %v3118_v1 }
 0x840   : > { %2476 = vmatpush3.bf16.msra.mxu0 %v2475_v42  ;;  %v1147_v9 = vcombine.high %v1139_v4, %v2627_v11  ;;  %v917_v40 = vrot.slane %v894_v37, %v3123_v5  ;;  %v1397_v42 = vrot.slane %v1383_v38, %v3118_v1  ;;  %v910_v44 = vcombine.high %v894_v37, %v2627_v11 }
 0x841   : > { %2477 = vmatprep.subr.bf16.mxu0 %v2625_v3 }
 0x842   : > { %v1161_v12 = vrot.slane %v1147_v9, %v3123_v5  ;;  %v1420_v43 = vrot.slane %v1397_v42, %v3123_v5 }
 0x844   : > { %2479 = vmatpush3.bf16.msra.mxu0 %v2478_v45  ;;  %v1178_v15 = vcombine.high %v1161_v12, %v2627_v11  ;;  %v1413_v45 = vcombine.high %v1397_v42, %v2627_v11 }
 0x845   : > { %2480 = vmatprep.subr.bf16.mxu0 %v2625_v3 }
 0x846   : > { %v1427_v46 = vrot.slane %v1413_v45, %v3123_v5 }
 0x848   : > { %2482 = vmatpush3.bf16.msra.mxu0 %v2481_v48  ;;  %v1431_v48 = vcombine.high %v1427_v46, %v2627_v11 }
 0x849   : > { %2483 = vmatprep.subr.bf16.mxu0 %v2625_v3 }
 0x84c   : > { %2485 = vmatpush3.bf16.msra.mxu0 %v2484_v52 }
 0x84d   : > { %2486 = vmatprep.subr.bf16.mxu0 %v2625_v3  ;;  %v3126_v3 = vrot.slane %v1139_v4, %v3123_v5 }
 0x84f   : > { %v1177_v8 = vcombine.high %v3126_v3, %v2627_v11 }
 0x850   : > { %2488 = vmatpush3.bf16.msra.mxu0 %v2487_v56 }
 0x8ad   : > { %v1624_v20 = vpop.xlane.xlu0 %1623 }
 0x8ae   : > { %v1625_v21 = vsub.f32 %v1621_v17, %v1624_v20 }
 0x8b0   : > { %v1626_v22 = vmul.f32 1.442695, %v1625_v21 }
 0x8b1   : > { %v1718_v23 = vpop.permute.xlu0 %1717 }
 0x8b2   : > { %2555 = vpow2.f32 %v1626_v22  ;;  %2354 = vmatpush3.msra.mxu1 %v1718_v23  ;;  %v887_v23 = vrot.slane %v2996_v39, %v3118_v1  ;;  %v927_v39 = vcombine.high %v917_v40, %v2627_v11 }
 0x8b4   : > { %v895_v30 = vcombine.high %v887_v23, %v2627_v11 }
 0x8b5   : > { %v1829_v49 = vpop.permute.xlu0 %1828 }
 0x8b6   : > { %v909_v31 = vrot.slane %v895_v30, %v3123_v5  ;;  %v1839_v52 = vsel %vm790_vm1, %v3007_v41, %v1829_v49 }
 0x8b8   : > { %v926_v34 = vcombine.high %v909_v31, %v2627_v11 }
 0x8b9   : > { %v1833_v50 = vpop.permute.xlu0 %1832 }
 0x8ba   : > { %v1840_v53 = vsel %vm1801_vm3, %v1839_v52, %v1833_v50 }
 0x8bc   : > { %v2556_v24 = vpop.eup %2555 }
 0x8bd   : > { %v1628_v25 = vsel %vm868_vm2, %v2556_v24, 0.0 }
 0x8be   : > { %1629 = vadd.xlane.f32.xlu1 %v1628_v25  ;;  %v3161_v25 = vrot.slane %v887_v23, %v3123_v5 }
 0x94b   : > { %v1630_v26 = vpop.xlane.xlu1 %1629 }
 0x94c   : > { %2557 = vrcp.f32 %v1630_v26  ;;  %v1390_v26 = vrot.slane %v3038_v13, %v3118_v1  ;;  %v924_v13 = vrot.slane %v910_v44, %v3123_v5 }
 0x94e   : > { %v1398_v32 = vcombine.high %v1390_v26, %v2627_v11  ;;  %v928_v47 = vcombine.high %v924_v13, %v2627_v11 }
 0x950   : > { %v1412_v33 = vrot.slane %v1398_v32, %v3123_v5 }
 0x952   : > { %v1429_v36 = vcombine.high %v1412_v33, %v2627_v11 }
 0x956   : > { %v2558_v27 = vpop.eup %2557 }
 0x957   : > { %v3055_v28 = vmul.f32 %v2558_v27, %v2556_v24  ;;  %v925_v27 = vcombine.high %v3161_v25, %v2627_v11 }
 0x959   : > { %2356 = vmatmul.mubr.msk.f32.vlgmr.msra.gmra.mrb[16].mxu1 %vm868_vm2, %v3055_v28  ;;  %v3134_v10 = vrot.slane %v3055_v28, %v3118_v1  ;;  %v1633_v16 = vcombine.high %v3055_v28, %v2627_v11  ;;  %v3169_v28 = vrot.slane %v1390_v26, %v3123_v5 }
 0x95b   : > { %v1648_v14 = vcombine.high %v3134_v10, %v2627_v11  ;;  %v1647_v18 = vrot.slane %v1633_v16, %v3118_v1  ;;  %v1428_v29 = vcombine.high %v3169_v28, %v2627_v11  ;;  %v1655_v41 = vrot.slane %v3134_v10, %v3123_v5 }
 0x95d   : > { %v1662_v58 = vrot.slane %v1648_v14, %v3123_v5  ;;  %v1670_v19 = vrot.slane %v1647_v18, %v3123_v5  ;;  %v1663_v21 = vcombine.high %v1647_v18, %v2627_v11 }
 0x95f   : > { %v1679_v17 = vcombine.high %v1662_v58, %v2627_v11  ;;  %v1680_v20 = vcombine.high %v1670_v19, %v2627_v11  ;;  %v1677_v22 = vrot.slane %v1663_v21, %v3123_v5 }
 0x961   : > { %v1681_v24 = vcombine.high %v1677_v22, %v2627_v11 }
 0xa2c   : > { %v1789_v6 = vpop.f32.mrb[16].mxu1 }
 0xa2d   : > { %1836 = vrot.lane.b32.xlu0 %v1789_v6, %s3366_s25  ;;  %v2357_v7 = vpop.f32.mrb[17].mxu1  ;;  %s2635_s25 = smov 24   ;;  %v1132_v6 = vcombine.high %v3022_v59, %v2627_v11 }
 0xa2e   : > { %v1678_v7 = vcombine.high %v1655_v41, %v2627_v11 }
 0xa31   : > { %1182 = vrot.lane.b32.xlu0 %v1177_v8, %s2633_s20  ;;  %v1146_v8 = vrot.slane %v1132_v6, %v3118_v1  ;;  %v1430_v1 = vcombine.high %v1420_v43, %v2627_v11 }
 0xa33   : > { %v1169_v9 = vrot.slane %v1146_v8, %v3123_v5 }
 0xa35   : > { %1186 = vrot.lane.b32.xlu0 %v1161_v12, %s2634_s26  ;;  %v1162_v12 = vcombine.high %v1146_v8, %v2627_v11 }
 0xa37   : > { %v1176_v10 = vrot.slane %v1162_v12, %v3123_v5 }
 0xa39   : > { %1687 = vrot.lane.b32.xlu0 %v1662_v58, %s2634_s26  ;;  %v1180_v59 = vcombine.high %v1176_v10, %v2627_v11 }
 0xa3d   : > { %1190 = vrot.lane.b32.xlu0 %v1178_v15, %s2635_s25 }
 0xa41   : > { %1691 = vrot.lane.b32.xlu0 %v1679_v17, %s2635_s25 }
 0xa45   : > { %1695 = vrot.lane.b32.xlu0 %v1670_v19, %s3367_s27 }
 0xa49   : > { %1699 = vrot.lane.b32.xlu0 %v1680_v20, %s2636_s15 }
 0xa4d   : > { %1703 = vrot.lane.b32.xlu0 %v1677_v22, %s2637_s28 }
 0xa51   : > { %1707 = vrot.lane.b32.xlu0 %v1681_v24, %s2638_s18 }
 0xa55   : > { %930 = vrot.lane.b32.xlu0 %v925_v27, %s2633_s20 }
 0xa59   : > { %1433 = vrot.lane.b32.xlu0 %v1428_v29, %s2633_s20 }
 0xa5d   : > { %934 = vrot.lane.b32.xlu0 %v909_v31, %s2634_s26 }
 0xa61   : > { %1437 = vrot.lane.b32.xlu0 %v1412_v33, %s2634_s26  ;;  %s483_s26 = sand.u32 1, %s2615_s30  }
 0xa65   : > { %938 = vrot.lane.b32.xlu0 %v926_v34, %s2635_s25 }
 0xa69   : > { %1441 = vrot.lane.b32.xlu0 %v1429_v36, %s2635_s25 }
 0xa6d   : > { %942 = vrot.lane.b32.xlu0 %v917_v40, %s3367_s27 }
 0xa71   : > { %1445 = vrot.lane.b32.xlu0 %v1420_v43, %s3367_s27 }
 0xa75   : > { %946 = vrot.lane.b32.xlu0 %v927_v39, %s2636_s15 }
 0xa79   : > { %950 = vrot.lane.b32.xlu0 %v924_v13, %s2637_s28 }
 0xa7d   : > { %1453 = vrot.lane.b32.xlu0 %v1427_v46, %s2637_s28 }
 0xa81   : > { %954 = vrot.lane.b32.xlu0 %v928_v47, %s2638_s18 }
 0xa85   : > { %1457 = vrot.lane.b32.xlu0 %v1431_v48, %s2638_s18 }
 0xa9f   : > { %v1837_v54 = vpop.permute.xlu0 %1836 }
 0xaa0   : > { %v1842_v56 = vsel %vm1841_vm4, %v1840_v53, %v1837_v54 }
 0xaa1   : > { %2391 = vmatmul.mubr.f32.vlgmr.msra.gmra.mrb[4].mxu0 %v1842_v56 }
 0xaa3   : > { %v1183_v14 = vpop.permute.xlu0 %1182 }
 0xaa4   : > { %v1209_v31 = vsel %vm868_vm2, %v3126_v3, %v1183_v14 }
 0xaa7   : > { %v1187_v58 = vpop.permute.xlu0 %1186 }
 0xaa8   : > { %v1210_v33 = vsel %vm958_vm6, %v1209_v31, %v1187_v58 }
 0xaab   : > { %v1688_v15 = vpop.permute.xlu0 %1687 }
 0xaaf   : > { %v1191_v16 = vpop.permute.xlu0 %1190 }
 0xab0   : > { %v1211_v35 = vsel %vm960_vm7, %v1210_v33, %v1191_v16 }
 0xab3   : > { %v1692_v17 = vpop.permute.xlu0 %1691 }
 0xab7   : > { %v1696_v21 = vpop.permute.xlu0 %1695 }
 0xabb   : > { %v1700_v27 = vpop.permute.xlu0 %1699 }
 0xabf   : > { %v1704_v36 = vpop.permute.xlu0 %1703 }
 0xac3   : > { %v1708_v44 = vpop.permute.xlu0 %1707 }
 0xac7   : > { %v931_v45 = vpop.permute.xlu0 %930 }
 0xacb   : > { %v1434_v46 = vpop.permute.xlu0 %1433 }
 0xacf   : > { %v935_v47 = vpop.permute.xlu0 %934 }
 0xad3   : > { %v1438_v48 = vpop.permute.xlu0 %1437 }
 0xad7   : > { %v939_v49 = vpop.permute.xlu0 %938 }
 0xadb   : > { %v1442_v50 = vpop.permute.xlu0 %1441 }
 0xadf   : > { %v943_v52 = vpop.permute.xlu0 %942 }
 0xae3   : > { %v1446_v53 = vpop.permute.xlu0 %1445 }
 0xae7   : > { %v947_v54 = vpop.permute.xlu0 %946 }
 0xaeb   : > { %v951_v56 = vpop.permute.xlu0 %950 }
 0xb74   : > { %v1932_v55 = vpop.f32.mrb[4].mxu0 }
 0xb75   : > { %v1933_v63 = vadd.f32 %v2122_v57, %v1932_v55  ;;  %v2392_v0 = vpop.f32.mrb[5].mxu0  ;;  %v1454_v57 = vpop.permute.xlu0 %1453  ;;  %v1460_v55 = vsel %vm868_vm2, %v3169_v28, %v1434_v46 }
 0xb77   : > { %v1936_v2 = vadd.f32 %v1933_v63, %v2895_v51  ;;  %v1179_v51 = vcombine.high %v1169_v9, %v2627_v11  ;;  %v1461_v63 = vsel %vm958_vm6, %v1460_v55, %v1438_v48 }
 0xb79   : > { %v1940_v4 = vsel %vm1939_vm5, %v1936_v2, 0.0  ;;  %v955_v60 = vpop.permute.xlu0 %954 }
 0xb7a   : > { %1941 = vadd.xlane.f32.xlu1 %v1940_v4  ;;  %v2639_v4 = vmov 1966171168  }
 0xb7d   : > { %v1458_v8 = vpop.permute.xlu0 %1457 }
 0xb8b   : > { %1683 = vrot.lane.b32.xlu1 %v1678_v7, %s2633_s20  ;;  %v957_v7 = vsel %vm868_vm2, %v3161_v25, %v931_v45  ;;  %s2106_s20 = sshll.u32 %s2866_s22, 1 }
 0xb8f   : > { %1194 = vrot.lane.b32.xlu1 %v1169_v9, %s3367_s27 }
 0xb93   : > { %1198 = vrot.lane.b32.xlu1 %v1179_v51, %s2636_s15  ;;  %v959_v51 = vsel %vm958_vm6, %v957_v7, %v935_v47 }
 0xb94   : > { %v961_v12 = vsel %vm960_vm7, %v959_v51, %v939_v49 }
 0xb97   : > { %1202 = vrot.lane.b32.xlu1 %v1176_v10, %s2637_s28  ;;  %s2102_s28 = sshll.u32 %s483_s26, 3 }
 0xb98   : > { %s485_s25 = scalar_lea.vmem [#allocation2], %s2102_s28 }
 0xb9b   : > { %1206 = vrot.lane.b32.xlu1 %v1180_v59, %s2638_s18  ;;  %v962_v59 = vsel %vm790_vm1, %v961_v12, %v943_v52  ;;  %s1971_s18 = scalar_lea.sflag [#allocation3], %s483_s26 }
 0xb9c   : > { %v964_v58 = vsel %vm963_vm8, %v962_v59, %v947_v54 }
 0xb9d   : > { %v966_v25 = vsel %vm965_vm9, %v964_v58, %v951_v56 }
 0xb9f   : > { %1449 = vrot.lane.b32.xlu1 %v1430_v1, %s2636_s15  ;;  %s507_s15 = scalar_lea.vmem %s3347_s14, %s2106_s20  ;;  %s1988_s20 = sshll.u32 %s485_s25, 4  ;;  %s3293_s20 = int_to_ptr.vmem [resolvable:$true] %s1988_s20 }
 0xba0   : > { %s2561_s0 = scalar_lea.vmem %s3293_s20, 128 }
 0xba1   : > { %p2562_p11 = scmp.ne.s32.totalorder %s3293_s20, %s2561_s0 }
 0xba3   : > { %p2563_p12 = pnand %p2562_p11, %p2754_p5 }
 0xba5   : > { %p2564_p13 = pneg %p2563_p12 }
 0xc07   : > { %v1942_v18 = vpop.xlane.xlu1 %1941 }
 0xc08   : > { %v1943_v19 = vmul.f32 0.00862069, %v1942_v18 }
 0xc0a   : > { %v3234_v20 = vsub.f32 %v1936_v2, %v1943_v19  ;;  %v1462_v2 = vsel %vm960_vm7, %v1461_v63, %v1442_v50 }
 0xc0b   : > { %v1684_v5 = vpop.permute.xlu1 %1683  ;;  %v1463_v6 = vsel %vm790_vm1, %v1462_v2, %v1446_v53 }
 0xc0c   : > { %v1945_v22 = vsel %vm1939_vm5, %v3234_v20, 0.0  ;;  %v1710_v23 = vsel %vm868_vm2, %v1655_v41, %v1684_v5  ;;  %v1808_v41 = vunpack.c.l.s4 %v2639_v4 }
 0xc0d   : > { %v1946_v24 = vmul.f32 %v1945_v22, %v1945_v22  ;;  %v1711_v26 = vsel %vm958_vm6, %v1710_v23, %v1688_v15 }
 0xc0e   : > { %v1712_v29 = vsel %vm960_vm7, %v1711_v26, %v1692_v17  ;;  %v1809_v10 = vunpack.c.0.s8 %v1808_v41  ;;  %v968_v17 = vsel %vm967_vm10, %v966_v25, %v955_v60  ;;  %v2123_v26 = vld [vmem:[%s3344_s11] ss:$0 sm:$0xff] }
 0xc0f   : > { %1947 = vadd.xlane.f32.xlu1 %v1946_v24  ;;  %v1195_v11 = vpop.permute.xlu1 %1194  ;;  %v1713_v32 = vsel %vm790_vm1, %v1712_v29, %v1696_v21  ;;  %v2124_v29 = vld [vmem:[%s3345_s12] ss:$0 sm:$0xff] }
 0xc10   : > { %v1212_v37 = vsel %vm790_vm1, %v1211_v35, %v1195_v11  ;;  %v1714_v38 = vsel %vm963_vm8, %v1713_v32, %v1700_v27  ;;  %v1812_v19 = vsub.s32 %v1809_v10, %v3115_v62 }
 0xc11   : > { %v1715_v39 = vsel %vm965_vm9, %v1714_v38, %v1704_v36 }
 0xc12   : > { %v1716_v13 = vsel %vm967_vm10, %v1715_v39, %v1708_v44 }
 0xc13   : > { %v1199_v30 = vpop.permute.xlu1 %1198 }
 0xc14   : > { %v1213_v40 = vsel %vm963_vm8, %v1212_v37, %v1199_v30 }
 0xc17   : > { %v1203_v34 = vpop.permute.xlu1 %1202 }
 0xc18   : > { %v1214_v42 = vsel %vm965_vm9, %v1213_v40, %v1203_v34 }
 0xc1b   : > { %v1207_v3 = vpop.permute.xlu1 %1206 }
 0xc1c   : > { %v1215_v43 = vsel %vm967_vm10, %v1214_v42, %v1207_v3 }
 0xc1d   : > { %1794 = vrot.lane.b32.xlu0 %v1215_v43, %s3368_s19 }
 0xc1f   : > { %v1450_v0 = vpop.permute.xlu1 %1449 }
 0xc20   : > { %1798 = vrot.lane.b32.xlu1 %v1716_v13, %s3368_s19  ;;  %v1464_v9 = vsel %vm963_vm8, %v1463_v6, %v1450_v0  ;;  %s2126_s19 = sshll.u32 %s2737_s17, 7  ;;  %s2640_s17 = smov [#allocation2]  }
 0xc21   : > { %v1465_v1 = vsel %vm965_vm9, %v1464_v9, %v1454_v57  ;;  %s2565_s28 = sshll.u32 %s2640_s17, 4  ;;  %s2566_s28 = int_to_ptr.vmem [resolvable:$false] %s2565_s28 }
 0xc22   : > { %v1466_v18 = vsel %vm967_vm10, %v1465_v1, %v1458_v8  ;;  %s2567_s22 = scalar_lea.vmem %s2566_s28, 256  ;;  %p2568_p0 = scmp.lt.s32.totalorder %s3293_s20, %s2566_s28 }
 0xc23   : > { %p2569_p1 = scmp.lt.s32.totalorder %s2567_s22, %s2561_s0 }
 0xc25   : > { %p2570_p2 = por %p2569_p1, %p2568_p0 }
 0xc27   : > { %p2571_p3 = pnand %p2570_p2, %p2564_p13 }
 0xc8f   : > { %v1795_v15 = vpop.permute.xlu0 %1794 }
 0xc90   : > { %v1802_v21 = vsel %vm1801_vm3, %v968_v17, %v1795_v15 }
 0xc9c   : > { %v1948_v28 = vpop.xlane.xlu1 %1947 }
 0xc9d   : > { %v1949_v14 = vmul.f32 0.00862069, %v1948_v28 }
 0xc9f   : > { %v1950_v16 = vadd.f32 1e-05, %v1949_v14 }
 0xca0   : > { %v1799_v5 = vpop.permute.xlu1 %1798 }
 0xca1   : > { %2559 = vrsqrt.f32 %v1950_v16  ;;  %v1803_v22 = vsel %vm1801_vm3, %v1466_v18, %v1799_v5 }
 0xca2   : > { %v1806_v23 = vcombine.low %v1802_v21, %v1803_v22 }
 0xca4   : > { %v1813_v24 = vrot.slane %v1806_v23, %v1812_v19 }
 0xca6   : > { %v1820_v11 = vrot.slane %v1813_v24, %v1812_v19 }
 0xca8   : > { %1826 = vst.msk [vmem:[%s507_s15] sm:$0x3] %vm1824_vm11, %v1820_v11  ;;  %s3291_s15 = scalar_lea.hbm %s3346_s13, %s2126_s19 }
 0xcab   : > { %v2560_v62 = vpop.eup %2559 }
 0xcac   : > { %v1952_v27 = vmul.f32 %v2560_v62, %v3234_v20 }
 0xcae   : > { %v1960_v30 = vmul.f32 %v2123_v26, %v1952_v27 }
 0xcb0   : > { %v1968_v61 = vadd.f32 %v2124_v29, %v1960_v30 }
 0xcb2   : > { %1969 = vst [vmem:[%s485_s25] sm:$0xff] %v1968_v61 }
 0xcb3   : > { %2574 = shalt.err (!%p2571_p3)
}
 0xcb4   : > { %s2575_s1 = scalar_lea.hbm %s3291_s15, 128  ;;  %s2579_s19 = scalar_lea.hbm %s3346_s13, 256 }
 0xcb5   : > { %p2576_p4 = scmp.ne.s32.totalorder %s3291_s15, %s2575_s1  ;;  %p2580_p9 = scmp.lt.u32.totalorder %s3291_s15, %s3346_s13 }
 0xcb6   : > { %p2581_p10 = scmp.lt.u32.totalorder %s2579_s19, %s2575_s1  ;;  %p2583_p12 = scmp.lt.u32.totalorder %s2575_s1, %s3291_s15 }
 0xcb7   : > { %p2577_p7 = pnand %p2576_p4, %p2754_p5 }
 0xcb8   : > { %p2582_p11 = por %p2581_p10, %p2580_p9 }
 0xcb9   : > { %p2578_p8 = pneg %p2577_p7 }
 0xcba   : > { %p2584_p13 = por %p2583_p12, %p2582_p11 }
 0xcbc   : > { %p2585_p0 = pnand %p2584_p13, %p2578_p8 }
 0xcbe   : > { %2588 = shalt.err (!%p2585_p0)
}
 0xcbf   : > { %2489 = dma.vmem_to_hbm [thread:$0]  (%p2754_p5), %s3293_s20, 128, %s3291_s15, %s1971_s18  }
 0xcc0 PF: > { %p2495_p1 = scmp.ge.s32.totalorder %s2623_s16, 2  ;;  %s2003_s0 = sand.u32 1, %s2611_s29  }
 0xcc1   : > { %s2004_s17 = scalar_lea.sflag [#allocation3], %s2003_s0 }
 0xcc2   : > { %p2492_p2 = pnand %p2495_p1, %p2758_p6 }
 0xcc4   : > { %2606 = dma.done.wait (!%p2492_p2), %s2004_s17, 128  }
 0xcc5   : > { %2608 = vsyncadd (!%p2492_p2), %s2004_s17, 4294967168  ;;  %s3369_s16 = sld [smem:[#allocation6_spill]]  ;;  %s3370_s28 = sld [smem:[#allocation5_spill]] }
 0xcc6   : > { %s3371_s15 = sld [smem:[#allocation7_spill]]  ;;  %s3372_s29 = smov %s2615_s30 }
 0xccb   : > { %p25_p3 = scmp.ge.s32.totalorder %s3369_s16, 4   ;;  %s3373_s30 = smov %s3370_s28 }
 0xccd   :  { %27 = sbr.rel (!%p25_p3) target bundleno = 6 (0x6), region = 125 }
 0xcd4   :  { %2016 = vsyncpa [#allocation3], 1 }
 0xcd5   :  { %2018 = vsyncpa [#allocation3 + $0x1], 1 }

</bundles_post_ra>
